<compile_context>
chip_gen: v7x
topology: tpu7x:2x2x1
jax: 0.10.0
libtpu: 0.0.40
codegen_flags: <defaults>
</compile_context>

<pallas_src>
import functools

import jax
import jax.numpy as jnp
from jax.experimental import pallas as pl
from jax.experimental.pallas import tpu as pltpu

K = 3      # kernel size (fixed by the module)
PAD = 1    # padding (fixed by the module)
KK = K * K


# ----------------------------------------------------------------------------
# Pallas kernels
# ----------------------------------------------------------------------------
def _offset_idx_kernel(H, W,
                       p_ref, wdy_ref, wdx_ref, bdy_ref, bdx_ref,
                       by_ref, bx_ref, ki_ref, kj_ref,
                       idx_ref, wgt_ref):
    # grid = (B, HW // LB); one (batch, lane-block) per step, both "parallel".
    # p_ref   : (C*KK, LB)  im2col patches, output pixels on lanes
    # wdy_ref : (KK, C*KK)  offset-conv rows producing dy (tap-major)
    # wdx_ref : (KK, C*KK)  offset-conv rows producing dx
    # bdy_ref / bdx_ref : (KK, 1)
    # by_ref / bx_ref   : (1, LB)   integer base coords of each output pixel
    # ki_ref / kj_ref   : (KK, 1)   kernel-tap row/col offsets
    # idx_ref : (4, KK, LB) int32   flattened in-image corner index (0 if masked)
    # wgt_ref : (4, KK, LB) f32     bilinear corner weight        (0 if masked)
    hi = jax.lax.Precision.HIGHEST
    patches = p_ref[...]                                              # (CKK, LB)
    dy = jnp.dot(wdy_ref[...], patches,
                 preferred_element_type=jnp.float32, precision=hi) + bdy_ref[...]
    dx = jnp.dot(wdx_ref[...], patches,
                 preferred_element_type=jnp.float32, precision=hi) + bdx_ref[...]

    y = by_ref[...] + ki_ref[...] - float(PAD) + dy                   # (KK, LB)
    x = bx_ref[...] + kj_ref[...] - float(PAD) + dx
    inside = (y > -1.0) & (y < float(H)) & (x > -1.0) & (x < float(W))

    y0 = jnp.floor(y)
    x0 = jnp.floor(x)
    ly = y - y0
    lx = x - x0
    hy = 1.0 - ly
    hx = 1.0 - lx

    # Incremental corner linear indices (saves 3 of 4 multiplies in the VPU-bound loop).
    # Exact in f32 while H*W < 2^24.
    lin00 = y0 * float(W) + x0
    vy0 = (y0 >= 0.0) & (y0 <= float(H - 1))
    vy1 = (y0 >= -1.0) & (y0 <= float(H - 2))       # y0 + 1 in range
    vx0 = (x0 >= 0.0) & (x0 <= float(W - 1))
    vx1 = (x0 >= -1.0) & (x0 <= float(W - 2))       # x0 + 1 in range

    corners = ((vy0 & vx0, hy * hx, 0.0),
               (vy0 & vx1, hy * lx, 1.0),
               (vy1 & vx0, ly * hx, float(W)),
               (vy1 & vx1, ly * lx, float(W) + 1.0))
    for r, (vc, wc, dlin) in enumerate(corners):
        v = inside & vc
        # Invalid corners gather pixel 0 with weight 0 (harmless for finite inputs).
        idx_ref[r] = jnp.where(v, lin00 + dlin, 0.0).astype(jnp.int32)
        wgt_ref[r] = jnp.where(v, wc, 0.0)


def _deform_matmul_kernel(g_ref, w_ref, b_ref, o_ref):
    # grid = (B, HW // LB); one (batch, lane-block) per step, both "parallel".
    # g_ref : (C*4*KK, LB) bf16  gathered, bilinear-weighted corner values
    # w_ref : (OC, C*4*KK) bf16  conv weight replicated over the 4 corners
    # b_ref : (OC, 1)      f32
    # o_ref : (OC, LB)     f32   lane-dense output
    acc = jnp.dot(w_ref[...], g_ref[...], preferred_element_type=jnp.float32)
    o_ref[...] = acc + b_ref[...]


# ----------------------------------------------------------------------------
# Glue (plain JAX)
# ----------------------------------------------------------------------------
def _im2col(x_nchw, k, pad):
    # returns (B, C*k*k, H*W); feature index = c*k*k + (i*k + j)  -- pure reshape, no transpose
    B, C, H, W = x_nchw.shape
    xp = jnp.pad(x_nchw, ((0, 0), (0, 0), (pad, pad), (pad, pad)))
    cols = [xp[:, :, i:i + H, j:j + W] for i in range(k) for j in range(k)]
    patches = jnp.stack(cols, axis=2)               # (B, C, k*k, H, W)
    return patches.reshape(B, C * k * k, H * W)


def _lane_block(n, target, min_blocks=1):
    # largest multiple-of-128 divisor of n that is <= target and gives >= min_blocks steps
    best = None
    lb = 128
    while lb <= min(n, target):
        if n % lb == 0 and n // lb >= min_blocks:
            best = lb
        lb += 128
    return best if best is not None else n          # full-dim block is always legal


# ----------------------------------------------------------------------------
# Forward pass (DeformConv2D.forward equivalent)
# ----------------------------------------------------------------------------
@jax.jit
def deform_conv2d_forward(x, w_off, b_off, weight, bias):
    B, C, H, W = x.shape
    HW = H * W
    OC = weight.shape[0]
    CKK = C * KK

    # keep >= 2 parallel grid steps even when B == 1 (v7x has 2 TensorCores)
    min_blocks = 2 if B == 1 else 1
    lb1 = _lane_block(HW, 2048, min_blocks)
    lb2 = _lane_block(HW, 1024, min_blocks)

    # ---- stage 1: offset conv fused with bilinear index/weight computation (f32) ----
    patches = _im2col(x, K, PAD)                            # (B, CKK, HW)
    w_off_mat = w_off.reshape(2 * KK, CKK)                  # row 2t = dy_t, 2t+1 = dx_t
    w_dy, w_dx = w_off_mat[0::2], w_off_mat[1::2]           # (KK, CKK) each
    b_dy = b_off[0::2].reshape(KK, 1)
    b_dx = b_off[1::2].reshape(KK, 1)

    pix = jnp.arange(HW, dtype=jnp.int32)
    base_y = (pix // W).astype(jnp.float32).reshape(1, HW)
    base_x = (pix % W).astype(jnp.float32).reshape(1, HW)
    ki_col = (jnp.arange(KK) // K).astype(jnp.float32).reshape(KK, 1)
    kj_col = (jnp.arange(KK) % K).astype(jnp.float32).reshape(KK, 1)

    const2d = lambda b, l: (0, 0)
    idx, wgt = pl.pallas_call(
        functools.partial(_offset_idx_kernel, H, W),
        out_shape=(jax.ShapeDtypeStruct((B, 4, KK, HW), jnp.int32),
                   jax.ShapeDtypeStruct((B, 4, KK, HW), jnp.float32)),
        grid_spec=pltpu.PrefetchScalarGridSpec(
            num_scalar_prefetch=0,
            grid=(B, HW // lb1),
            in_specs=[
                pl.BlockSpec((None, CKK, lb1), lambda b, l: (b, 0, l)),
                pl.BlockSpec((KK, CKK), const2d),
                pl.BlockSpec((KK, CKK), const2d),
                pl.BlockSpec((KK, 1), const2d),
                pl.BlockSpec((KK, 1), const2d),
                pl.BlockSpec((1, lb1), lambda b, l: (0, l)),
                pl.BlockSpec((1, lb1), lambda b, l: (0, l)),
                pl.BlockSpec((KK, 1), const2d),
                pl.BlockSpec((KK, 1), const2d),
            ],
            out_specs=(pl.BlockSpec((None, 4, KK, lb1), lambda b, l: (b, 0, 0, l)),
                       pl.BlockSpec((None, 4, KK, lb1), lambda b, l: (b, 0, 0, l))),
        ),
        compiler_params=pltpu.CompilerParams(
            dimension_semantics=("parallel", "parallel")),
    )(patches, w_dy, w_dx, b_dy, b_dx, base_y, base_x, ki_col, kj_col)

    # ---- stage 2: 4-corner gather (XLA, weighting fused) + Pallas bf16 matmul ----
    # TODO(synk): move the 4-corner gather itself in-kernel once Mosaic exposes a
    # reliable dynamic (sublane) gather; today only this gather runs outside Pallas.
    x_flat = x.reshape(B, C, HW)
    idx_r = idx.reshape(B, 4 * KK, HW)
    wgt_r = wgt.reshape(B, 4 * KK, HW)
    g = jax.vmap(lambda xf, ix: jnp.take(xf, ix, axis=1))(x_flat, idx_r)  # (B, C, 4KK, HW)
    gw = (g * wgt_r[:, None, :, :]).astype(jnp.bfloat16)                  # weighting fused
    gw = gw.reshape(B, C * 4 * KK, HW)                                    # free (major dims)

    # conv weight replicated over the 4 corners -> corner sum folds into the contraction
    w3 = weight.reshape(OC, C, KK)
    w_rep = jnp.broadcast_to(w3[:, :, None, :], (OC, C, 4, KK)) \
              .reshape(OC, C * 4 * KK).astype(jnp.bfloat16)
    bias_col = bias.reshape(OC, 1).astype(jnp.float32)

    out = pl.pallas_call(
        _deform_matmul_kernel,
        out_shape=jax.ShapeDtypeStruct((B, OC, HW), jnp.float32),
        grid_spec=pltpu.PrefetchScalarGridSpec(
            num_scalar_prefetch=0,
            grid=(B, HW // lb2),
            in_specs=[
                pl.BlockSpec((None, C * 4 * KK, lb2), lambda b, l: (b, 0, l)),
                pl.BlockSpec((OC, C * 4 * KK), lambda b, l: (0, 0)),
                pl.BlockSpec((OC, 1), lambda b, l: (0, 0)),
            ],
            out_specs=pl.BlockSpec((None, OC, lb2), lambda b, l: (b, 0, l)),
        ),
        compiler_params=pltpu.CompilerParams(
            dimension_semantics=("parallel", "parallel"),
            vmem_limit_bytes=32 * 1024 * 1024),
    )(gw, w_rep, bias_col)

    return out.reshape(B, OC, H, W)     # HW already on lanes -> NCHW is a free reshape


# ----------------------------------------------------------------------------
# Pure-JAX reference (torchvision deform_conv2d semantics) for validation
# ----------------------------------------------------------------------------
def _deform_conv2d_ref(x, offset, weight, bias, pad):
    B, C, H, W = x.shape
    OC = weight.shape[0]
    off = offset.transpose(0, 2, 3, 1).reshape(B, H, W, KK, 2)
    dy, dx = off[..., 0], off[..., 1]
    hh = jnp.arange(H, dtype=jnp.float32)[None, :, None, None]
    ww = jnp.arange(W, dtype=jnp.float32)[None, None, :, None]
    ki = (jnp.arange(KK) // K).astype(jnp.float32)
    kj = (jnp.arange(KK) % K).astype(jnp.float32)
    y = hh - pad + ki + dy
    xs = ww - pad + kj + dx
    valid = (y > -1) & (y < H) & (xs > -1) & (xs < W)
    y0, x0 = jnp.floor(y), jnp.floor(xs)
    y1, x1 = y0 + 1.0, x0 + 1.0
    ly, lx = y - y0, xs - x0
    hy, hx = 1.0 - ly, 1.0 - lx

    def corner(yc, xc, wgt):
        v = valid & (yc >= 0) & (yc <= H - 1) & (xc >= 0) & (xc <= W - 1)
        yi = jnp.clip(yc.astype(jnp.int32), 0, H - 1)
        xi = jnp.clip(xc.astype(jnp.int32), 0, W - 1)
        vals = jax.vmap(lambda img, yb, xb: img[:, yb, xb])(x, yi, xi)  # (B,C,H,W,KK)
        w = jnp.where(v, wgt, 0.0)[:, None]
        return vals * w

    sampled = (corner(y0, x0, hy * hx) + corner(y0, x1, hy * lx)
               + corner(y1, x0, ly * hx) + corner(y1, x1, ly * lx))
    out = jnp.einsum("bchwk,ock->bohw", sampled, weight.reshape(OC, C, KK),
                     precision=jax.lax.Precision.HIGHEST)
    return out + bias[None, :, None, None]


def _full_ref(x, w_off, b_off, weight, bias):
    offset = jax.lax.conv_general_dilated(
        x, w_off, window_strides=(1, 1), padding=((PAD, PAD), (PAD, PAD)),
        dimension_numbers=("NCHW", "OIHW", "NCHW"),
        precision=jax.lax.Precision.HIGHEST)
    offset = offset + b_off[None, :, None, None]
    return _deform_conv2d_ref(x, offset, weight, bias, PAD)


# ----------------------------------------------------------------------------
if __name__ == "__main__":
    B, C, H, W = 2, 4, 16, 16
    OC = 8

    key = jax.random.PRNGKey(0)
    kx, kw, kow, kob = jax.random.split(key, 4)

    # deterministic parameter init (matches module __init__ shapes)
    x = jax.random.normal(kx, (B, C, H, W), jnp.float32)
    weight = 0.01 * jax.random.normal(kw, (OC, C, K, K), jnp.float32)   # main conv weight
    bias = jnp.zeros((OC,), jnp.float32)                                # main conv bias
    fan_in = C * K * K
    bound = 1.0 / (fan_in ** 0.5)                                       # Conv2d default init
    w_off = jax.random.uniform(kow, (2 * KK, C, K, K), jnp.float32, -bound, bound)
    b_off = jax.random.uniform(kob, (2 * KK,), jnp.float32, -bound, bound)

    out = deform_conv2d_forward(x, w_off, b_off, weight, bias)
    out = jax.block_until_ready(out)
    assert out.shape == (B, OC, H, W), out.shape

    ref = _full_ref(x, w_off, b_off, weight, bias)
    max_err = float(jnp.max(jnp.abs(out - ref)))
    # stage-2 runs in bf16 on the MXU -> slightly looser tolerance than pure f32
    assert jnp.allclose(out, ref, atol=5e-3, rtol=2e-2), f"max abs err = {max_err}"

    print("KERNEL_OK")
</pallas_src>

<mosaic_0001>
module attributes {stable_mosaic.version = 11 : i64} {
  func.func @_offset_idx_kernel(%arg0: i32, %arg1: i32, %arg2: memref<1x36x256xf32, #tpu.memory_space<vmem>>, %arg3: memref<9x36xf32, #tpu.memory_space<vmem>>, %arg4: memref<9x36xf32, #tpu.memory_space<vmem>>, %arg5: memref<9x1xf32, #tpu.memory_space<vmem>>, %arg6: memref<9x1xf32, #tpu.memory_space<vmem>>, %arg7: memref<1x256xf32, #tpu.memory_space<vmem>>, %arg8: memref<1x256xf32, #tpu.memory_space<vmem>>, %arg9: memref<9x1xf32, #tpu.memory_space<vmem>>, %arg10: memref<9x1xf32, #tpu.memory_space<vmem>>, %arg11: memref<1x4x9x256xi32, #tpu.memory_space<vmem>>, %arg12: memref<1x4x9x256xf32, #tpu.memory_space<vmem>>) attributes {dimension_semantics = [#tpu.dimension_semantics<parallel>, #tpu.dimension_semantics<parallel>], iteration_bounds = array<i64: 2, 1>, scalar_prefetch = 0 : i64, scratch_operands = 0 : i64, tpu.core_type = #tpu.core_type<tc>, window_params = [{transform_indices = @transform_0, window_bounds = array<i64: 1, 36, 256>}, {pipeline_mode = #tpu.pipeline_mode<synchronous>, transform_indices = @transform_1, window_bounds = array<i64: 9, 36>}, {pipeline_mode = #tpu.pipeline_mode<synchronous>, transform_indices = @transform_2, window_bounds = array<i64: 9, 36>}, {pipeline_mode = #tpu.pipeline_mode<synchronous>, transform_indices = @transform_3, window_bounds = array<i64: 9, 1>}, {pipeline_mode = #tpu.pipeline_mode<synchronous>, transform_indices = @transform_4, window_bounds = array<i64: 9, 1>}, {transform_indices = @transform_5, window_bounds = array<i64: 1, 256>}, {transform_indices = @transform_6, window_bounds = array<i64: 1, 256>}, {pipeline_mode = #tpu.pipeline_mode<synchronous>, transform_indices = @transform_7, window_bounds = array<i64: 9, 1>}, {pipeline_mode = #tpu.pipeline_mode<synchronous>, transform_indices = @transform_8, window_bounds = array<i64: 9, 1>}, {transform_indices = @transform_9, window_bounds = array<i64: 1, 4, 9, 256>}, {transform_indices = @transform_10, window_bounds = array<i64: 1, 4, 9, 256>}]} {
    %c0 = arith.constant 0 : index
    %c0_0 = arith.constant 0 : index
    %c0_1 = arith.constant 0 : index
    %0 = vector.load %arg2[%c0, %c0_0, %c0_1] : memref<1x36x256xf32, #tpu.memory_space<vmem>>, vector<1x36x256xf32>
    %1 = vector.shape_cast %0 : vector<1x36x256xf32> to vector<36x256xf32>
    %c0_2 = arith.constant 0 : index
    %c0_3 = arith.constant 0 : index
    %2 = vector.load %arg3[%c0_2, %c0_3] : memref<9x36xf32, #tpu.memory_space<vmem>>, vector<9x36xf32>
    %cst = arith.constant dense<0.000000e+00> : vector<9x256xf32>
    %3 = tpu.matmul %2, %1, %cst {dimension_numbers = #tpu.dot_dimension_numbers<[1], [0], [0], [1], [0, 0, 1, 1], [], []>, precision = #tpu.contract_precision<fp32>} : vector<9x36xf32>, vector<36x256xf32>, vector<9x256xf32> -> vector<9x256xf32>
    %c0_4 = arith.constant 0 : index
    %c0_5 = arith.constant 0 : index
    %4 = vector.load %arg5[%c0_4, %c0_5] : memref<9x1xf32, #tpu.memory_space<vmem>>, vector<9x1xf32>
    %5 = vector.broadcast %4 : vector<9x1xf32> to vector<9x256xf32>
    %6 = arith.addf %3, %5 : vector<9x256xf32>
    %c0_6 = arith.constant 0 : index
    %c0_7 = arith.constant 0 : index
    %7 = vector.load %arg4[%c0_6, %c0_7] : memref<9x36xf32, #tpu.memory_space<vmem>>, vector<9x36xf32>
    %cst_8 = arith.constant dense<0.000000e+00> : vector<9x256xf32>
    %8 = tpu.matmul %7, %1, %cst_8 {dimension_numbers = #tpu.dot_dimension_numbers<[1], [0], [0], [1], [0, 0, 1, 1], [], []>, precision = #tpu.contract_precision<fp32>} : vector<9x36xf32>, vector<36x256xf32>, vector<9x256xf32> -> vector<9x256xf32>
    %c0_9 = arith.constant 0 : index
    %c0_10 = arith.constant 0 : index
    %9 = vector.load %arg6[%c0_9, %c0_10] : memref<9x1xf32, #tpu.memory_space<vmem>>, vector<9x1xf32>
    %10 = vector.broadcast %9 : vector<9x1xf32> to vector<9x256xf32>
    %11 = arith.addf %8, %10 : vector<9x256xf32>
    %c0_11 = arith.constant 0 : index
    %c0_12 = arith.constant 0 : index
    %12 = vector.load %arg7[%c0_11, %c0_12] : memref<1x256xf32, #tpu.memory_space<vmem>>, vector<1x256xf32>
    %c0_13 = arith.constant 0 : index
    %c0_14 = arith.constant 0 : index
    %13 = vector.load %arg9[%c0_13, %c0_14] : memref<9x1xf32, #tpu.memory_space<vmem>>, vector<9x1xf32>
    %14 = vector.broadcast %12 : vector<1x256xf32> to vector<9x256xf32>
    %15 = vector.broadcast %13 : vector<9x1xf32> to vector<9x256xf32>
    %16 = arith.addf %14, %15 : vector<9x256xf32>
    %cst_15 = arith.constant 1.000000e+00 : f32
    %17 = vector.broadcast %cst_15 : f32 to vector<9x256xf32>
    %18 = arith.subf %16, %17 : vector<9x256xf32>
    %19 = arith.addf %18, %6 : vector<9x256xf32>
    %c0_16 = arith.constant 0 : index
    %c0_17 = arith.constant 0 : index
    %20 = vector.load %arg8[%c0_16, %c0_17] : memref<1x256xf32, #tpu.memory_space<vmem>>, vector<1x256xf32>
    %c0_18 = arith.constant 0 : index
    %c0_19 = arith.constant 0 : index
    %21 = vector.load %arg10[%c0_18, %c0_19] : memref<9x1xf32, #tpu.memory_space<vmem>>, vector<9x1xf32>
    %22 = vector.broadcast %20 : vector<1x256xf32> to vector<9x256xf32>
    %23 = vector.broadcast %21 : vector<9x1xf32> to vector<9x256xf32>
    %24 = arith.addf %22, %23 : vector<9x256xf32>
    %cst_20 = arith.constant 1.000000e+00 : f32
    %25 = vector.broadcast %cst_20 : f32 to vector<9x256xf32>
    %26 = arith.subf %24, %25 : vector<9x256xf32>
    %27 = arith.addf %26, %11 : vector<9x256xf32>
    %cst_21 = arith.constant -1.000000e+00 : f32
    %28 = vector.broadcast %cst_21 : f32 to vector<9x256xf32>
    %29 = arith.cmpf ogt, %19, %28 : vector<9x256xf32>
    %cst_22 = arith.constant 1.600000e+01 : f32
    %30 = vector.broadcast %cst_22 : f32 to vector<9x256xf32>
    %31 = arith.cmpf olt, %19, %30 : vector<9x256xf32>
    %32 = arith.andi %29, %31 : vector<9x256xi1>
    %cst_23 = arith.constant -1.000000e+00 : f32
    %33 = vector.broadcast %cst_23 : f32 to vector<9x256xf32>
    %34 = arith.cmpf ogt, %27, %33 : vector<9x256xf32>
    %35 = arith.andi %32, %34 : vector<9x256xi1>
    %cst_24 = arith.constant 1.600000e+01 : f32
    %36 = vector.broadcast %cst_24 : f32 to vector<9x256xf32>
    %37 = arith.cmpf olt, %27, %36 : vector<9x256xf32>
    %38 = arith.andi %35, %37 : vector<9x256xi1>
    %39 = math.floor %19 : vector<9x256xf32>
    %40 = math.floor %27 : vector<9x256xf32>
    %41 = arith.subf %19, %39 : vector<9x256xf32>
    %42 = arith.subf %27, %40 : vector<9x256xf32>
    %cst_25 = arith.constant 1.000000e+00 : f32
    %43 = vector.broadcast %cst_25 : f32 to vector<9x256xf32>
    %44 = arith.subf %43, %41 : vector<9x256xf32>
    %cst_26 = arith.constant 1.000000e+00 : f32
    %45 = vector.broadcast %cst_26 : f32 to vector<9x256xf32>
    %46 = arith.subf %45, %42 : vector<9x256xf32>
    %cst_27 = arith.constant 1.600000e+01 : f32
    %47 = vector.broadcast %cst_27 : f32 to vector<9x256xf32>
    %48 = arith.mulf %39, %47 : vector<9x256xf32>
    %49 = arith.addf %48, %40 : vector<9x256xf32>
    %cst_28 = arith.constant 0.000000e+00 : f32
    %50 = vector.broadcast %cst_28 : f32 to vector<9x256xf32>
    %51 = arith.cmpf oge, %39, %50 : vector<9x256xf32>
    %cst_29 = arith.constant 1.500000e+01 : f32
    %52 = vector.broadcast %cst_29 : f32 to vector<9x256xf32>
    %53 = arith.cmpf ole, %39, %52 : vector<9x256xf32>
    %54 = arith.andi %51, %53 : vector<9x256xi1>
    %cst_30 = arith.constant -1.000000e+00 : f32
    %55 = vector.broadcast %cst_30 : f32 to vector<9x256xf32>
    %56 = arith.cmpf oge, %39, %55 : vector<9x256xf32>
    %cst_31 = arith.constant 1.400000e+01 : f32
    %57 = vector.broadcast %cst_31 : f32 to vector<9x256xf32>
    %58 = arith.cmpf ole, %39, %57 : vector<9x256xf32>
    %59 = arith.andi %56, %58 : vector<9x256xi1>
    %cst_32 = arith.constant 0.000000e+00 : f32
    %60 = vector.broadcast %cst_32 : f32 to vector<9x256xf32>
    %61 = arith.cmpf oge, %40, %60 : vector<9x256xf32>
    %cst_33 = arith.constant 1.500000e+01 : f32
    %62 = vector.broadcast %cst_33 : f32 to vector<9x256xf32>
    %63 = arith.cmpf ole, %40, %62 : vector<9x256xf32>
    %64 = arith.andi %61, %63 : vector<9x256xi1>
    %cst_34 = arith.constant -1.000000e+00 : f32
    %65 = vector.broadcast %cst_34 : f32 to vector<9x256xf32>
    %66 = arith.cmpf oge, %40, %65 : vector<9x256xf32>
    %cst_35 = arith.constant 1.400000e+01 : f32
    %67 = vector.broadcast %cst_35 : f32 to vector<9x256xf32>
    %68 = arith.cmpf ole, %40, %67 : vector<9x256xf32>
    %69 = arith.andi %66, %68 : vector<9x256xi1>
    %70 = arith.andi %54, %64 : vector<9x256xi1>
    %71 = arith.mulf %44, %46 : vector<9x256xf32>
    %72 = arith.andi %54, %69 : vector<9x256xi1>
    %73 = arith.mulf %44, %42 : vector<9x256xf32>
    %74 = arith.andi %59, %64 : vector<9x256xi1>
    %75 = arith.mulf %41, %46 : vector<9x256xf32>
    %76 = arith.andi %59, %69 : vector<9x256xi1>
    %77 = arith.mulf %41, %42 : vector<9x256xf32>
    %78 = arith.andi %38, %70 : vector<9x256xi1>
    %cst_36 = arith.constant 0.000000e+00 : f32
    %79 = vector.broadcast %cst_36 : f32 to vector<9x256xf32>
    %80 = arith.addf %49, %79 : vector<9x256xf32>
    %cst_37 = arith.constant 0.000000e+00 : f32
    %81 = vector.broadcast %cst_37 : f32 to vector<9x256xf32>
    %82 = arith.select %78, %80, %81 : vector<9x256xi1>, vector<9x256xf32>
    %83 = arith.fptosi %82 : vector<9x256xf32> to vector<9x256xi32>
    %c0_38 = arith.constant 0 : index
    %c0_39 = arith.constant 0 : index
    %c0_40 = arith.constant 0 : index
    %c0_41 = arith.constant 0 : index
    %84 = vector.load %arg11[%c0_38, %c0_39, %c0_40, %c0_41] : memref<1x4x9x256xi32, #tpu.memory_space<vmem>>, vector<1x1x9x256xi32>
    %85 = vector.shape_cast %84 : vector<1x1x9x256xi32> to vector<9x256xi32>
    %86 = vector.shape_cast %83 : vector<9x256xi32> to vector<1x1x9x256xi32>
    tpu.vector_store %arg11[%c0_38, %c0_39, %c0_40, %c0_41], %86 {strides = array<i32>} : memref<1x4x9x256xi32, #tpu.memory_space<vmem>>, vector<1x1x9x256xi32>,
    %cst_42 = arith.constant 0.000000e+00 : f32
    %87 = vector.broadcast %cst_42 : f32 to vector<9x256xf32>
    %88 = arith.select %78, %71, %87 : vector<9x256xi1>, vector<9x256xf32>
    %c0_43 = arith.constant 0 : index
    %c0_44 = arith.constant 0 : index
    %c0_45 = arith.constant 0 : index
    %c0_46 = arith.constant 0 : index
    %89 = vector.load %arg12[%c0_43, %c0_44, %c0_45, %c0_46] : memref<1x4x9x256xf32, #tpu.memory_space<vmem>>, vector<1x1x9x256xf32>
    %90 = vector.shape_cast %89 : vector<1x1x9x256xf32> to vector<9x256xf32>
    %91 = vector.shape_cast %88 : vector<9x256xf32> to vector<1x1x9x256xf32>
    tpu.vector_store %arg12[%c0_43, %c0_44, %c0_45, %c0_46], %91 {strides = array<i32>} : memref<1x4x9x256xf32, #tpu.memory_space<vmem>>, vector<1x1x9x256xf32>,
    %92 = arith.andi %38, %72 : vector<9x256xi1>
    %cst_47 = arith.constant 1.000000e+00 : f32
    %93 = vector.broadcast %cst_47 : f32 to vector<9x256xf32>
    %94 = arith.addf %49, %93 : vector<9x256xf32>
    %cst_48 = arith.constant 0.000000e+00 : f32
    %95 = vector.broadcast %cst_48 : f32 to vector<9x256xf32>
    %96 = arith.select %92, %94, %95 : vector<9x256xi1>, vector<9x256xf32>
    %97 = arith.fptosi %96 : vector<9x256xf32> to vector<9x256xi32>
    %c0_49 = arith.constant 0 : index
    %c1 = arith.constant 1 : index
    %c0_50 = arith.constant 0 : index
    %c0_51 = arith.constant 0 : index
    %98 = vector.load %arg11[%c0_49, %c1, %c0_50, %c0_51] : memref<1x4x9x256xi32, #tpu.memory_space<vmem>>, vector<1x1x9x256xi32>
    %99 = vector.shape_cast %98 : vector<1x1x9x256xi32> to vector<9x256xi32>
    %100 = vector.shape_cast %97 : vector<9x256xi32> to vector<1x1x9x256xi32>
    tpu.vector_store %arg11[%c0_49, %c1, %c0_50, %c0_51], %100 {strides = array<i32>} : memref<1x4x9x256xi32, #tpu.memory_space<vmem>>, vector<1x1x9x256xi32>,
    %cst_52 = arith.constant 0.000000e+00 : f32
    %101 = vector.broadcast %cst_52 : f32 to vector<9x256xf32>
    %102 = arith.select %92, %73, %101 : vector<9x256xi1>, vector<9x256xf32>
    %c0_53 = arith.constant 0 : index
    %c1_54 = arith.constant 1 : index
    %c0_55 = arith.constant 0 : index
    %c0_56 = arith.constant 0 : index
    %103 = vector.load %arg12[%c0_53, %c1_54, %c0_55, %c0_56] : memref<1x4x9x256xf32, #tpu.memory_space<vmem>>, vector<1x1x9x256xf32>
    %104 = vector.shape_cast %103 : vector<1x1x9x256xf32> to vector<9x256xf32>
    %105 = vector.shape_cast %102 : vector<9x256xf32> to vector<1x1x9x256xf32>
    tpu.vector_store %arg12[%c0_53, %c1_54, %c0_55, %c0_56], %105 {strides = array<i32>} : memref<1x4x9x256xf32, #tpu.memory_space<vmem>>, vector<1x1x9x256xf32>,
    %106 = arith.andi %38, %74 : vector<9x256xi1>
    %cst_57 = arith.constant 1.600000e+01 : f32
    %107 = vector.broadcast %cst_57 : f32 to vector<9x256xf32>
    %108 = arith.addf %49, %107 : vector<9x256xf32>
    %cst_58 = arith.constant 0.000000e+00 : f32
    %109 = vector.broadcast %cst_58 : f32 to vector<9x256xf32>
    %110 = arith.select %106, %108, %109 : vector<9x256xi1>, vector<9x256xf32>
    %111 = arith.fptosi %110 : vector<9x256xf32> to vector<9x256xi32>
    %c0_59 = arith.constant 0 : index
    %c2 = arith.constant 2 : index
    %c0_60 = arith.constant 0 : index
    %c0_61 = arith.constant 0 : index
    %112 = vector.load %arg11[%c0_59, %c2, %c0_60, %c0_61] : memref<1x4x9x256xi32, #tpu.memory_space<vmem>>, vector<1x1x9x256xi32>
    %113 = vector.shape_cast %112 : vector<1x1x9x256xi32> to vector<9x256xi32>
    %114 = vector.shape_cast %111 : vector<9x256xi32> to vector<1x1x9x256xi32>
    tpu.vector_store %arg11[%c0_59, %c2, %c0_60, %c0_61], %114 {strides = array<i32>} : memref<1x4x9x256xi32, #tpu.memory_space<vmem>>, vector<1x1x9x256xi32>,
    %cst_62 = arith.constant 0.000000e+00 : f32
    %115 = vector.broadcast %cst_62 : f32 to vector<9x256xf32>
    %116 = arith.select %106, %75, %115 : vector<9x256xi1>, vector<9x256xf32>
    %c0_63 = arith.constant 0 : index
    %c2_64 = arith.constant 2 : index
    %c0_65 = arith.constant 0 : index
    %c0_66 = arith.constant 0 : index
    %117 = vector.load %arg12[%c0_63, %c2_64, %c0_65, %c0_66] : memref<1x4x9x256xf32, #tpu.memory_space<vmem>>, vector<1x1x9x256xf32>
    %118 = vector.shape_cast %117 : vector<1x1x9x256xf32> to vector<9x256xf32>
    %119 = vector.shape_cast %116 : vector<9x256xf32> to vector<1x1x9x256xf32>
    tpu.vector_store %arg12[%c0_63, %c2_64, %c0_65, %c0_66], %119 {strides = array<i32>} : memref<1x4x9x256xf32, #tpu.memory_space<vmem>>, vector<1x1x9x256xf32>,
    %120 = arith.andi %38, %76 : vector<9x256xi1>
    %cst_67 = arith.constant 1.700000e+01 : f32
    %121 = vector.broadcast %cst_67 : f32 to vector<9x256xf32>
    %122 = arith.addf %49, %121 : vector<9x256xf32>
    %cst_68 = arith.constant 0.000000e+00 : f32
    %123 = vector.broadcast %cst_68 : f32 to vector<9x256xf32>
    %124 = arith.select %120, %122, %123 : vector<9x256xi1>, vector<9x256xf32>
    %125 = arith.fptosi %124 : vector<9x256xf32> to vector<9x256xi32>
    %c0_69 = arith.constant 0 : index
    %c3 = arith.constant 3 : index
    %c0_70 = arith.constant 0 : index
    %c0_71 = arith.constant 0 : index
    %126 = vector.load %arg11[%c0_69, %c3, %c0_70, %c0_71] : memref<1x4x9x256xi32, #tpu.memory_space<vmem>>, vector<1x1x9x256xi32>
    %127 = vector.shape_cast %126 : vector<1x1x9x256xi32> to vector<9x256xi32>
    %128 = vector.shape_cast %125 : vector<9x256xi32> to vector<1x1x9x256xi32>
    tpu.vector_store %arg11[%c0_69, %c3, %c0_70, %c0_71], %128 {strides = array<i32>} : memref<1x4x9x256xi32, #tpu.memory_space<vmem>>, vector<1x1x9x256xi32>,
    %cst_72 = arith.constant 0.000000e+00 : f32
    %129 = vector.broadcast %cst_72 : f32 to vector<9x256xf32>
    %130 = arith.select %120, %77, %129 : vector<9x256xi1>, vector<9x256xf32>
    %c0_73 = arith.constant 0 : index
    %c3_74 = arith.constant 3 : index
    %c0_75 = arith.constant 0 : index
    %c0_76 = arith.constant 0 : index
    %131 = vector.load %arg12[%c0_73, %c3_74, %c0_75, %c0_76] : memref<1x4x9x256xf32, #tpu.memory_space<vmem>>, vector<1x1x9x256xf32>
    %132 = vector.shape_cast %131 : vector<1x1x9x256xf32> to vector<9x256xf32>
    %133 = vector.shape_cast %130 : vector<9x256xf32> to vector<1x1x9x256xf32>
    tpu.vector_store %arg12[%c0_73, %c3_74, %c0_75, %c0_76], %133 {strides = array<i32>} : memref<1x4x9x256xf32, #tpu.memory_space<vmem>>, vector<1x1x9x256xf32>,
    return
  }
  func.func @transform_0(%arg0: i32, %arg1: i32) -> (i32, i32, i32) {
    %c0_i32 = arith.constant 0 : i32
    %c0_i32_0 = arith.constant 0 : i32
    return %arg0, %c0_i32, %arg1 : i32, i32, i32
  }
  func.func @transform_1(%arg0: i32, %arg1: i32) -> (i32, i32) {
    %c0_i32 = arith.constant 0 : i32
    %c0_i32_0 = arith.constant 0 : i32
    %c0_i32_1 = arith.constant 0 : i32
    return %c0_i32, %c0_i32_0 : i32, i32
  }
  func.func @transform_2(%arg0: i32, %arg1: i32) -> (i32, i32) {
    %c0_i32 = arith.constant 0 : i32
    %c0_i32_0 = arith.constant 0 : i32
    %c0_i32_1 = arith.constant 0 : i32
    return %c0_i32, %c0_i32_0 : i32, i32
  }
  func.func @transform_3(%arg0: i32, %arg1: i32) -> (i32, i32) {
    %c0_i32 = arith.constant 0 : i32
    %c0_i32_0 = arith.constant 0 : i32
    %c0_i32_1 = arith.constant 0 : i32
    return %c0_i32, %c0_i32_0 : i32, i32
  }
  func.func @transform_4(%arg0: i32, %arg1: i32) -> (i32, i32) {
    %c0_i32 = arith.constant 0 : i32
    %c0_i32_0 = arith.constant 0 : i32
    %c0_i32_1 = arith.constant 0 : i32
    return %c0_i32, %c0_i32_0 : i32, i32
  }
  func.func @transform_5(%arg0: i32, %arg1: i32) -> (i32, i32) {
    %c0_i32 = arith.constant 0 : i32
    %c0_i32_0 = arith.constant 0 : i32
    return %c0_i32, %arg1 : i32, i32
  }
  func.func @transform_6(%arg0: i32, %arg1: i32) -> (i32, i32) {
    %c0_i32 = arith.constant 0 : i32
    %c0_i32_0 = arith.constant 0 : i32
    return %c0_i32, %arg1 : i32, i32
  }
  func.func @transform_7(%arg0: i32, %arg1: i32) -> (i32, i32) {
    %c0_i32 = arith.constant 0 : i32
    %c0_i32_0 = arith.constant 0 : i32
    %c0_i32_1 = arith.constant 0 : i32
    return %c0_i32, %c0_i32_0 : i32, i32
  }
  func.func @transform_8(%arg0: i32, %arg1: i32) -> (i32, i32) {
    %c0_i32 = arith.constant 0 : i32
    %c0_i32_0 = arith.constant 0 : i32
    %c0_i32_1 = arith.constant 0 : i32
    return %c0_i32, %c0_i32_0 : i32, i32
  }
  func.func @transform_9(%arg0: i32, %arg1: i32) -> (i32, i32, i32, i32) {
    %c0_i32 = arith.constant 0 : i32
    %c0_i32_0 = arith.constant 0 : i32
    %c0_i32_1 = arith.constant 0 : i32
    return %arg0, %c0_i32, %c0_i32_0, %arg1 : i32, i32, i32, i32
  }
  func.func @transform_10(%arg0: i32, %arg1: i32) -> (i32, i32, i32, i32) {
    %c0_i32 = arith.constant 0 : i32
    %c0_i32_0 = arith.constant 0 : i32
    %c0_i32_1 = arith.constant 0 : i32
    return %arg0, %c0_i32, %c0_i32_0, %arg1 : i32, i32, i32, i32
  }
}

module attributes {stable_mosaic.version = 11 : i64} {
  func.func @_deform_matmul_kernel(%arg0: i32, %arg1: i32, %arg2: memref<1x144x256xbf16, #tpu.memory_space<vmem>>, %arg3: memref<8x144xbf16, #tpu.memory_space<vmem>>, %arg4: memref<8x1xf32, #tpu.memory_space<vmem>>, %arg5: memref<1x8x256xf32, #tpu.memory_space<vmem>>) attributes {dimension_semantics = [#tpu.dimension_semantics<parallel>, #tpu.dimension_semantics<parallel>], iteration_bounds = array<i64: 2, 1>, scalar_prefetch = 0 : i64, scratch_operands = 0 : i64, tpu.core_type = #tpu.core_type<tc>, window_params = [{transform_indices = @transform_0, window_bounds = array<i64: 1, 144, 256>}, {pipeline_mode = #tpu.pipeline_mode<synchronous>, transform_indices = @transform_1, window_bounds = array<i64: 8, 144>}, {pipeline_mode = #tpu.pipeline_mode<synchronous>, transform_indices = @transform_2, window_bounds = array<i64: 8, 1>}, {transform_indices = @transform_3, window_bounds = array<i64: 1, 8, 256>}]} {
    %c0 = arith.constant 0 : index
    %c0_0 = arith.constant 0 : index
    %0 = vector.load %arg3[%c0, %c0_0] : memref<8x144xbf16, #tpu.memory_space<vmem>>, vector<8x144xbf16>
    %c0_1 = arith.constant 0 : index
    %c0_2 = arith.constant 0 : index
    %c0_3 = arith.constant 0 : index
    %1 = vector.load %arg2[%c0_1, %c0_2, %c0_3] : memref<1x144x256xbf16, #tpu.memory_space<vmem>>, vector<1x144x256xbf16>
    %2 = vector.shape_cast %1 : vector<1x144x256xbf16> to vector<144x256xbf16>
    %cst = arith.constant dense<0.000000e+00> : vector<8x256xf32>
    %3 = tpu.matmul %0, %2, %cst {dimension_numbers = #tpu.dot_dimension_numbers<[1], [0], [0], [1], [0, 0, 1, 1], [], []>} : vector<8x144xbf16>, vector<144x256xbf16>, vector<8x256xf32> -> vector<8x256xf32>
    %c0_4 = arith.constant 0 : index
    %c0_5 = arith.constant 0 : index
    %4 = vector.load %arg4[%c0_4, %c0_5] : memref<8x1xf32, #tpu.memory_space<vmem>>, vector<8x1xf32>
    %5 = vector.broadcast %4 : vector<8x1xf32> to vector<8x256xf32>
    %6 = arith.addf %3, %5 : vector<8x256xf32>
    %c0_6 = arith.constant 0 : index
    %c0_7 = arith.constant 0 : index
    %c0_8 = arith.constant 0 : index
    %7 = vector.load %arg5[%c0_6, %c0_7, %c0_8] : memref<1x8x256xf32, #tpu.memory_space<vmem>>, vector<1x8x256xf32>
    %8 = vector.shape_cast %7 : vector<1x8x256xf32> to vector<8x256xf32>
    %9 = vector.shape_cast %6 : vector<8x256xf32> to vector<1x8x256xf32>
    tpu.vector_store %arg5[%c0_6, %c0_7, %c0_8], %9 {strides = array<i32>} : memref<1x8x256xf32, #tpu.memory_space<vmem>>, vector<1x8x256xf32>,
    return
  }
  func.func @transform_0(%arg0: i32, %arg1: i32) -> (i32, i32, i32) {
    %c0_i32 = arith.constant 0 : i32
    %c0_i32_0 = arith.constant 0 : i32
    return %arg0, %c0_i32, %arg1 : i32, i32, i32
  }
  func.func @transform_1(%arg0: i32, %arg1: i32) -> (i32, i32) {
    %c0_i32 = arith.constant 0 : i32
    %c0_i32_0 = arith.constant 0 : i32
    %c0_i32_1 = arith.constant 0 : i32
    return %c0_i32, %c0_i32_0 : i32, i32
  }
  func.func @transform_2(%arg0: i32, %arg1: i32) -> (i32, i32) {
    %c0_i32 = arith.constant 0 : i32
    %c0_i32_0 = arith.constant 0 : i32
    %c0_i32_1 = arith.constant 0 : i32
    return %c0_i32, %c0_i32_0 : i32, i32
  }
  func.func @transform_3(%arg0: i32, %arg1: i32) -> (i32, i32, i32) {
    %c0_i32 = arith.constant 0 : i32
    %c0_i32_0 = arith.constant 0 : i32
    return %arg0, %c0_i32, %arg1 : i32, i32, i32
  }
}

</mosaic_0001>

<bundles_post_ra>
// kernel: deform_conv2d_forward.2
= control target key start
LH: loop header
LB: loop body
LE: loop exit
PB: predicated region body
PF: predicated region fallthrough
CT: control target
= control target key end

     0   :  { %s2580_s13 = smov 0   ;;  %s2582_s14 = smov 0   ;;  %s3383_s0 = inlined_call_operand.vmem [shape: f32[2,36,256], index: 0, kind: input, shape index: {}]   ;;  %s3384_s1 = inlined_call_operand.vmem [shape: f32[9,36], index: 1, kind: input, shape index: {}]   ;;  %s3385_s2 = inlined_call_operand.vmem [shape: f32[9,36], index: 2, kind: input, shape index: {}]   ;;  %s3386_s3 = inlined_call_operand.vmem [shape: f32[9,1], index: 3, kind: input, shape index: {}]   ;;  %s3387_s4 = inlined_call_operand.vmem [shape: f32[9,1], index: 4, kind: input, shape index: {}]   ;;  %s3388_s5 = inlined_call_operand.vmem [shape: f32[1,256], index: 5, kind: input, shape index: {}]   ;;  %s3389_s6 = inlined_call_operand.vmem [shape: f32[1,256], index: 6, kind: input, shape index: {}]   ;;  %s3390_s7 = inlined_call_operand.vmem [shape: f32[9,1], index: 7, kind: input, shape index: {}]   ;;  %s3391_s8 = inlined_call_operand.vmem [shape: f32[9,1], index: 8, kind: input, shape index: {}]   ;;  %s3392_s9 = inlined_call_operand.vmem [shape: s32[2,4,9,256], index: 9, kind: output, shape index: {0}]   ;;  %s3393_s10 = inlined_call_operand.vmem [shape: f32[2,4,9,256], index: 10, kind: output, shape index: {1}]  }
   0x1   :  { %s2584_s15 = smov 0  }
   0x2 LB: > { %s33_s16 = sadd.s32 1, %s2517_s14  ;;  %p2252_p0 = scmp.ge.s32.totalorder %s2521_s15, 1  ;;  %s2521_s15 = sphi %s2584_s15, %s21_s15   ;;  %s2517_s14 = sphi %s2582_s14, %s3438_s14   ;;  %s2513_s13 = sphi %s2580_s13, %s3437_s13  }
   0x3   : > { %p35_p1 = scmp.ge.s32.totalorder %s33_s16, 2  ;;  %p358_p2 = scmp.lt.s32.totalorder %s2521_s15, 3 }
   0x5   : > { %s3440_s16 = smov (%p35_p1, %s33_s16), 0  ;;  %p359_p3 = pnand %p2252_p0, %p358_p2 }
   0x6   : > { %p422_p4 = scmp.lt.s32.totalorder (!%p359_p3), %s2513_s13, 1  ;;  %v471_v0 = vld [vmem:[%s3384_s1] sm:$0xff] (!%p359_p3)  ;;  %vm485_vm0 = vcmask (!%p359_p3), 293888   ;;  %v2523_v2 = vmov (!%p359_p3), 0.0   ;;  %v472_v5 = vld [vmem:[%s3384_s1 + $0x8] sm:$0x1] (!%p359_p3) }
   0x7   : > { %362 = sbr.rel (%p359_p3) target bundleno = 371 (0x173), region = 56  ;;  %v1117_v1 = vld [vmem:[%s3385_s2] sm:$0xff] (!%p359_p3)  ;;  %573 = vmatprep.mubr.f32.mxu0 (!%p359_p3), %v2523_v2  ;;  %1211 = vmatprep.mubr.f32.mxu1 (!%p359_p3), %v2523_v2  ;;  %v487_v3 = vsel (!%p359_p3), %vm485_vm0, %v471_v0, 0  ;;  %v1118_v6 = vld [vmem:[%s3385_s2 + $0x8] sm:$0x1] (!%p359_p3)  ;;  %v490_v9 = vsel (!%p359_p3), %vm485_vm0, %v472_v5, 0 }
   0x8   : > { %v1132_v4 = vsel (!%p359_p3), %vm485_vm0, %v1117_v1, 0  ;;  %v2614_v7 = vand.u32 (!%p359_p3), 4294901760, %v487_v3  ;;  %v1135_v10 = vsel (!%p359_p3), %vm485_vm0, %v1118_v6, 0  ;;  %v1756_v11 = vld [vmem:[%s3390_s7] sm:$0xff] (!%p359_p3)  ;;  %v2621_v12 = vand.u32 (!%p359_p3), 4294901760, %v490_v9 }
   0x9   : > { %v2616_v8 = vand.u32 (!%p359_p3), 4294901760, %v1132_v4  ;;  %v2623_v13 = vand.u32 (!%p359_p3), 4294901760, %v1135_v10  ;;  %v473_v14 = vld [vmem:[%s3386_s3] sm:$0xff] (!%p359_p3)  ;;  %v2524_v17 = vmov (!%p359_p3), 0   ;;  %v1757_v22 = vld [vmem:[%s3390_s7 + $0x8] sm:$0x1] (!%p359_p3) }
   0xa   : > { %v2630_v15 = vsub.f32 (!%p359_p3), %v487_v3, %v2614_v7  ;;  %2498 = vset.pattern.permute.xlu1 (!%p359_p3), %v2524_v17  ;;  %2497 = vset.pattern.permute.xlu0 (!%p359_p3), %v2524_v17  ;;  %v2636_v18 = vsub.f32 (!%p359_p3), %v490_v9, %v2621_v12  ;;  %v474_v23 = vld [vmem:[%s3386_s3 + $0x8] sm:$0x1] (!%p359_p3)  ;;  %vm492_vm1 = vcmask (!%p359_p3), 1043456   ;;  %v1792_v56 = vld [vmem:[%s3391_s8] sm:$0xff] (!%p359_p3) }
   0xb   : > { %v2633_v16 = vsub.f32 (!%p359_p3), %v1132_v4, %v2616_v8  ;;  %v2639_v19 = vsub.f32 (!%p359_p3), %v1135_v10, %v2623_v13  ;;  %1771 = vperm.xlu0 (!%p359_p3), %2497, %v1756_v11   ;;  %477 = vperm.xlu1 (!%p359_p3), %2498, %v473_v14   ;;  %v1793_v57 = vld [vmem:[%s3391_s8 + $0x8] sm:$0x1] (!%p359_p3)  ;;  %v1119_v17 = vld [vmem:[%s3387_s4] sm:$0xff] (!%p359_p3) }
   0xc   : > { %v576_v20 = vand.u32 (!%p359_p3), 4294901760, %v2630_v15  ;;  %v587_v27 = vand.u32 (!%p359_p3), 4294901760, %v2636_v18 }
   0xd   : > { %v1214_v21 = vand.u32 (!%p359_p3), 4294901760, %v2633_v16  ;;  %v1225_v28 = vand.u32 (!%p359_p3), 4294901760, %v2639_v19 }
   0xe   : > { %s3442_s13 = smov (!%p422_p4, %s2513_s13), 1  ;;  %v2657_v35 = vsub.f32 %v2630_v15, %v576_v20 }
   0xf   : > { %s2438_s29 = smul.u32 80, %s3442_s13  ;;  %v2662_v41 = vsub.f32 %v2633_v16, %v1214_v21  ;;  %1776 = vperm.xlu0 %2497, %v1757_v22   ;;  %482 = vperm.xlu1 %2498, %v474_v23   ;;  %v1120_v22 = vld [vmem:[%s3387_s4 + $0x8] sm:$0x1]  ;;  %s2292_s17 = sshll.u32 %s3442_s13, 7 }
  0x10   : > { %v578_v59 = vand.u32 4294901760, %v2657_v35  ;;  %s2981_s20 = scalar_lea.vmem %s3393_s10, %s2292_s17  ;;  %s3009_s23 = scalar_lea.vmem %s3392_s9, %s2292_s17 }
  0x11   : > { %s429_s12 = scalar_lea.vmem %s3383_s0, %s2438_s29  ;;  %v1216_v63 = vand.u32 4294901760, %v2662_v41 }
  0x12   : > { %v462_v24 = vld [vmem:[%s429_s12 + $0x8] sm:$0xff]  ;;  %v464_v25 = vld [vmem:[%s429_s12 + $0x18] sm:$0xff]  ;;  %v461_v26 = vld [vmem:[%s429_s12] sm:$0xff] }
  0x13   : > { %v499_v29 = vand.u32 4294901760, %v462_v24  ;;  %v503_v30 = vand.u32 4294901760, %v464_v25  ;;  %v463_v31 = vld [vmem:[%s429_s12 + $0x10] sm:$0xff]  ;;  %v501_v32 = vand.u32 4294901760, %v461_v26  ;;  %v466_v33 = vld [vmem:[%s429_s12 + $0x28] sm:$0xff]  ;;  %v468_v34 = vld [vmem:[%s429_s12 + $0x38] sm:$0xff]  ;;  %1807 = vperm.xlu0 %2497, %v1792_v56   ;;  %1812 = vperm.xlu1 %2498, %v1793_v57  }
  0x14   : > { %v505_v36 = vand.u32 4294901760, %v463_v31  ;;  %v507_v37 = vand.u32 4294901760, %v466_v33  ;;  %v511_v38 = vand.u32 4294901760, %v468_v34  ;;  %v465_v39 = vld [vmem:[%s429_s12 + $0x20] sm:$0xff]  ;;  %v467_v40 = vld [vmem:[%s429_s12 + $0x30] sm:$0xff] }
  0x15   : > { %v2664_v42 = vpack.c.bf16 %v503_v30, %v499_v29  ;;  %v509_v43 = vand.u32 4294901760, %v465_v39  ;;  %v513_v44 = vand.u32 4294901760, %v467_v40  ;;  %v470_v45 = vld [vmem:[%s429_s12 + $0x48] sm:$0xf]  ;;  %v469_v46 = vld [vmem:[%s429_s12 + $0x40] sm:$0xf]  ;;  %v2666_v47 = vsub.f32 %v462_v24, %v499_v29 }
  0x16   : > { %v2668_v48 = vpack.c.bf16 %v505_v36, %v501_v32  ;;  %v2670_v49 = vpack.c.bf16 %v511_v38, %v507_v37  ;;  %v2673_v50 = vsel %vm492_vm1, %v470_v45, 0  ;;  %v2676_v51 = vsel %vm492_vm1, %v469_v46, 0 }
  0x17   : > { %2295 = vmatprep.subr.bf16.mxu0 %v2664_v42  ;;  %2343 = vmatprep.subr.bf16.mxu1 %v2664_v42  ;;  %v2680_v52 = vpack.c.bf16 %v513_v44, %v509_v43  ;;  %v2683_v53 = vand.u32 4294901760, %v2673_v50  ;;  %v2686_v54 = vand.u32 4294901760, %v2676_v51  ;;  %v598_v55 = vand.u32 4294901760, %v2666_v47 }
  0x18   : > { %2297 = vmatpush1.bf16.msra.mxu0 %v2668_v48  ;;  %2345 = vmatpush1.bf16.msra.mxu1 %v2668_v48  ;;  %v2697_v58 = vsub.f32 %v464_v25, %v503_v30  ;;  %v2700_v60 = vsub.f32 %v461_v26, %v501_v32  ;;  %v2702_v61 = vsub.f32 %v463_v31, %v505_v36 }
  0x19   : > { %2299 = vmatprep.subr.bf16.mxu0 %v2670_v49  ;;  %2347 = vmatprep.subr.bf16.mxu1 %v2670_v49  ;;  %v599_v62 = vsub.f32 %v2666_v47, %v598_v55  ;;  %v2710_v0 = vsub.f32 %v466_v33, %v507_v37  ;;  %v2712_v1 = vsub.f32 %v468_v34, %v511_v38 }
  0x1a   : > { %v610_v3 = vand.u32 4294901760, %v2697_v58  ;;  %v604_v4 = vand.u32 4294901760, %v2700_v60  ;;  %v616_v5 = vand.u32 4294901760, %v2702_v61  ;;  %v2717_v6 = vsub.f32 %v465_v39, %v509_v43  ;;  %1123 = vperm.xlu0 %2497, %v1119_v17   ;;  %1128 = vperm.xlu1 %2498, %v1120_v22  }
  0x1b   : > { %v600_v9 = vand.u32 4294901760, %v599_v62  ;;  %v622_v10 = vand.u32 4294901760, %v2710_v0  ;;  %v634_v11 = vand.u32 4294901760, %v2712_v1  ;;  %v2721_v14 = vsub.f32 %v467_v40, %v513_v44 }
  0x1c   : > { %2301 = vmatpush1.bf16.msra.mxu0 %v2680_v52  ;;  %2349 = vmatpush1.bf16.msra.mxu1 %v2680_v52  ;;  %v611_v23 = vsub.f32 %v2697_v58, %v610_v3  ;;  %v605_v24 = vsub.f32 %v2700_v60, %v604_v4  ;;  %v617_v25 = vsub.f32 %v2702_v61, %v616_v5  ;;  %v628_v26 = vand.u32 4294901760, %v2717_v6 }
  0x1d   : > { %516 = vmatprep.subr.mxu0 %v2683_v53  ;;  %1154 = vmatprep.subr.mxu1 %v2683_v53  ;;  %v623_v29 = vsub.f32 %v2710_v0, %v622_v10  ;;  %v635_v30 = vsub.f32 %v2712_v1, %v634_v11  ;;  %v640_v31 = vand.u32 4294901760, %v2721_v14  ;;  %v588_v32 = vsub.f32 %v2636_v18, %v587_v27 }
  0x1e   : > { %v612_v33 = vand.u32 4294901760, %v611_v23  ;;  %v606_v34 = vand.u32 4294901760, %v605_v24  ;;  %v618_v35 = vand.u32 4294901760, %v617_v25  ;;  %v629_v36 = vsub.f32 %v2717_v6, %v628_v26 }
  0x1f   : > { %v624_v37 = vand.u32 4294901760, %v623_v29  ;;  %v636_v38 = vand.u32 4294901760, %v635_v30  ;;  %v641_v39 = vsub.f32 %v2721_v14, %v640_v31  ;;  %v1226_v44 = vsub.f32 %v2639_v19, %v1225_v28 }
  0x20   : > { %518 = vmatpush1.msra.mxu0 %v2686_v54  ;;  %1156 = vmatpush1.msra.mxu1 %v2686_v54  ;;  %v2302_v40 = vpack.c.bf16 %v612_v33, %v600_v9  ;;  %v2304_v41 = vpack.c.bf16 %v618_v35, %v606_v34  ;;  %v630_v43 = vand.u32 4294901760, %v629_v36  ;;  %v645_v56 = vsub.f32 %v2673_v50, %v2683_v53 }
  0x21   : > { %579 = vmatmul.mubr.f32.vlgmr.msra.gmra.mrb[0].mxu0 %v578_v59  ;;  %1217 = vmatmul.mubr.f32.vlgmr.msra.gmra.mrb[0].mxu1 %v1216_v63  ;;  %v2306_v45 = vpack.c.bf16 %v636_v38, %v624_v37  ;;  %v642_v46 = vand.u32 4294901760, %v641_v39  ;;  %v651_v57 = vsub.f32 %v2676_v51, %v2686_v54  ;;  %v589_v62 = vand.u32 4294901760, %v588_v32 }
  0x22   : > { %2303 = vmatprep.subr.bf16.mxu0 %v2302_v40  ;;  %2351 = vmatprep.subr.bf16.mxu1 %v2302_v40  ;;  %v1227_v9 = vand.u32 4294901760, %v1226_v44  ;;  %v2768_v22 = vand.u32 4294901760, %v645_v56  ;;  %v2310_v24 = vpack.c.bf16 %v2697_v58, %v2666_v47  ;;  %v2312_v25 = vpack.c.bf16 %v2702_v61, %v2700_v60 }
  0x23   : > { %2305 = vmatpush1.bf16.msra.mxu0 %v2304_v41  ;;  %2353 = vmatpush1.bf16.msra.mxu1 %v2304_v41  ;;  %v2308_v17 = vpack.c.bf16 %v642_v46, %v630_v43  ;;  %v2770_v23 = vand.u32 4294901760, %v651_v57  ;;  %v2314_v29 = vpack.c.bf16 %v2712_v1, %v2710_v0  ;;  %v2316_v30 = vpack.c.bf16 %v2721_v14, %v2717_v6 }
  0x24   : > { %2307 = vmatprep.subr.bf16.mxu0 %v2306_v45  ;;  %2355 = vmatprep.subr.bf16.mxu1 %v2306_v45  ;;  %v647_v50 = vsub.f32 %v645_v56, %v2768_v22  ;;  %v2326_v32 = vpack.c.bf16 %v610_v3, %v598_v55  ;;  %v2328_v33 = vpack.c.bf16 %v616_v5, %v604_v4 }
  0x25   : > { %584 = vmatprep.mubr.f32.mxu0 %v2523_v2  ;;  %1222 = vmatprep.mubr.f32.mxu1 %v2523_v2  ;;  %v653_v51 = vsub.f32 %v651_v57, %v2770_v23  ;;  %v2330_v47 = vpack.c.bf16 %v634_v11, %v622_v10  ;;  %v2332_v55 = vpack.c.bf16 %v640_v31, %v628_v26 }
  0x26   : > { %590 = vmatmul.mubr.f32.gmra.mrb[2].mxu0 %v589_v62  ;;  %1228 = vmatmul.mubr.f32.gmra.mrb[2].mxu1 %v1227_v9  ;;  %v648_v59 = vand.u32 4294901760, %v647_v50 }
  0x27   : > { %2309 = vmatpush1.bf16.msra.mxu0 %v2308_v17  ;;  %2357 = vmatpush1.bf16.msra.mxu1 %v2308_v17  ;;  %v654_v63 = vand.u32 4294901760, %v653_v51 }
  0x28   : > { %710 = vmatprep.mubr.f32.mxu0 %v2523_v2  ;;  %1348 = vmatprep.mubr.f32.mxu1 %v2523_v2 }
  0x29   : > { %649 = vmatprep.subr.mxu0 %v648_v59  ;;  %1287 = vmatprep.subr.mxu1 %v648_v59 }
  0x2b   : > { %655 = vmatpush1.msra.mxu0 %v654_v63  ;;  %1293 = vmatpush1.msra.mxu1 %v654_v63 }
  0x2c   : > { %2311 = vmatprep.subr.bf16.mxu0 %v2310_v24  ;;  %2359 = vmatprep.subr.bf16.mxu1 %v2310_v24 }
  0x2d   : > { %712 = vmatmul.mubr.f32.vlgmr.msra.gmra.mrb[0].mxu0 %v2614_v7  ;;  %1350 = vmatmul.mubr.f32.vlgmr.msra.gmra.mrb[0].mxu1 %v2616_v8 }
  0x2e   : > { %2313 = vmatpush1.bf16.msra.mxu0 %v2312_v25  ;;  %2361 = vmatpush1.bf16.msra.mxu1 %v2312_v25 }
  0x2f   : > { %2315 = vmatprep.subr.bf16.mxu0 %v2314_v29  ;;  %2363 = vmatprep.subr.bf16.mxu1 %v2314_v29 }
  0x30   : > { %717 = vmatprep.mubr.f32.mxu0 %v2523_v2  ;;  %1355 = vmatprep.mubr.f32.mxu1 %v2523_v2 }
  0x31   : > { %719 = vmatmul.mubr.f32.gmra.mrb[2].mxu0 %v2621_v12  ;;  %1357 = vmatmul.mubr.f32.gmra.mrb[2].mxu1 %v2623_v13 }
  0x32   : > { %2317 = vmatpush1.bf16.msra.mxu0 %v2316_v30  ;;  %2365 = vmatpush1.bf16.msra.mxu1 %v2316_v30 }
  0x33   : > { %751 = vmatprep.subr.mxu0 %v645_v56  ;;  %1389 = vmatprep.subr.mxu1 %v645_v56 }
  0x34   : > { %809 = vmatprep.mubr.f32.mxu0 %v2523_v2  ;;  %1447 = vmatprep.mubr.f32.mxu1 %v2523_v2 }
  0x36   : > { %754 = vmatpush1.msra.mxu0 %v651_v57  ;;  %1392 = vmatpush1.msra.mxu1 %v651_v57 }
  0x37   : > { %2319 = vmatprep.subr.bf16.mxu0 %v2664_v42  ;;  %2367 = vmatprep.subr.bf16.mxu1 %v2664_v42 }
  0x38   : > { %812 = vmatmul.mubr.f32.vlgmr.msra.gmra.mrb[0].mxu0 %v2630_v15  ;;  %1450 = vmatmul.mubr.f32.vlgmr.msra.gmra.mrb[0].mxu1 %v2633_v16  ;;  %v1759_v15 = vlaneseq }
  0x39   : > { %2321 = vmatpush1.bf16.msra.mxu0 %v2668_v48  ;;  %2369 = vmatpush1.bf16.msra.mxu1 %v2668_v48 }
  0x3a   : > { %2323 = vmatprep.subr.bf16.mxu0 %v2670_v49  ;;  %2371 = vmatprep.subr.bf16.mxu1 %v2670_v49 }
  0x3b   : > { %817 = vmatprep.mubr.f32.mxu0 %v2523_v2  ;;  %1455 = vmatprep.mubr.f32.mxu1 %v2523_v2 }
  0x3c   : > { %820 = vmatmul.mubr.f32.gmra.mrb[2].mxu0 %v2636_v18  ;;  %1458 = vmatmul.mubr.f32.gmra.mrb[2].mxu1 %v2639_v19  ;;  %v1760_v18 = vshrl.u32 %v1759_v15, 7 }
  0x3d   : > { %2325 = vmatpush1.bf16.msra.mxu0 %v2680_v52  ;;  %2373 = vmatpush1.bf16.msra.mxu1 %v2680_v52 }
  0x3e   : > { %843 = vmatprep.subr.mxu0 %v2683_v53  ;;  %1481 = vmatprep.subr.mxu1 %v2683_v53 }
  0x3f   : > { %900 = vmatprep.mubr.f32.mxu0 %v2523_v2  ;;  %1538 = vmatprep.mubr.f32.mxu1 %v2523_v2 }
  0x41   : > { %845 = vmatpush1.msra.mxu0 %v2686_v54  ;;  %1483 = vmatpush1.msra.mxu1 %v2686_v54 }
  0x42   : > { %2327 = vmatprep.subr.bf16.mxu0 %v2326_v32  ;;  %2375 = vmatprep.subr.bf16.mxu1 %v2326_v32 }
  0x43   : > { %904 = vmatmul.mubr.f32.vlgmr.msra.gmra.mrb[0].mxu0 %v576_v20  ;;  %1542 = vmatmul.mubr.f32.vlgmr.msra.gmra.mrb[0].mxu1 %v1214_v21  ;;  %v1761_v20 = vsub.s32 0, %v1760_v18 }
  0x44   : > { %2329 = vmatpush1.bf16.msra.mxu0 %v2328_v33  ;;  %2377 = vmatpush1.bf16.msra.mxu1 %v2328_v33 }
  0x45   : > { %2331 = vmatprep.subr.bf16.mxu0 %v2330_v47  ;;  %2379 = vmatprep.subr.bf16.mxu1 %v2330_v47 }
  0x46   : > { %909 = vmatprep.mubr.f32.mxu0 %v2523_v2  ;;  %1547 = vmatprep.mubr.f32.mxu1 %v2523_v2 }
  0x47   : > { %913 = vmatmul.mubr.f32.gmra.mrb[2].mxu0 %v587_v27  ;;  %1551 = vmatmul.mubr.f32.gmra.mrb[2].mxu1 %v1225_v28 }
  0x48   : > { %2333 = vmatpush1.bf16.msra.mxu0 %v2332_v55  ;;  %2381 = vmatpush1.bf16.msra.mxu1 %v2332_v55 }
  0x49   : > { %954 = vmatprep.subr.mxu0 %v2768_v22  ;;  %1592 = vmatprep.subr.mxu1 %v2768_v22 }
  0x4a   : > { %1013 = vmatprep.mubr.f32.mxu0 %v2523_v2  ;;  %1651 = vmatprep.mubr.f32.mxu1 %v2523_v2 }
  0x4c   : > { %958 = vmatpush1.msra.mxu0 %v2770_v23  ;;  %1596 = vmatpush1.msra.mxu1 %v2770_v23 }
  0x4d   : > { %2335 = vmatprep.subr.bf16.mxu0 %v2664_v42  ;;  %2383 = vmatprep.subr.bf16.mxu1 %v2664_v42 }
  0x4e   : > { %1015 = vmatmul.mubr.f32.vlgmr.msra.gmra.mrb[0].mxu0 %v2614_v7  ;;  %1653 = vmatmul.mubr.f32.vlgmr.msra.gmra.mrb[0].mxu1 %v2616_v8 }
  0x4f   : > { %2337 = vmatpush1.bf16.msra.mxu0 %v2668_v48  ;;  %2385 = vmatpush1.bf16.msra.mxu1 %v2668_v48 }
  0x50   : > { %2339 = vmatprep.subr.bf16.mxu0 %v2670_v49  ;;  %2387 = vmatprep.subr.bf16.mxu1 %v2670_v49 }
  0x51   : > { %1020 = vmatprep.mubr.f32.mxu0 %v2523_v2  ;;  %1658 = vmatprep.mubr.f32.mxu1 %v2523_v2 }
  0x52   : > { %1022 = vmatmul.mubr.f32.gmra.mrb[2].mxu0 %v2621_v12  ;;  %1660 = vmatmul.mubr.f32.gmra.mrb[2].mxu1 %v2623_v13 }
  0x53   : > { %2341 = vmatpush1.bf16.msra.mxu0 %v2680_v52  ;;  %2389 = vmatpush1.bf16.msra.mxu1 %v2680_v52 }
  0x54   : > { %1045 = vmatprep.subr.mxu0 %v2683_v53  ;;  %1683 = vmatprep.subr.mxu1 %v2683_v53 }
  0x55   : > { %1102 = vmatprep.mubr.f32.mxu0 %v2523_v2  ;;  %1740 = vmatprep.mubr.f32.mxu1 %v2523_v2 }
  0x57   : > { %1047 = vmatpush1.msra.mxu0 %v2686_v54  ;;  %1685 = vmatpush1.msra.mxu1 %v2686_v54 }
  0x58   : > { %1104 = vmatmul.mubr.f32.vlgmr.msra.gmra.mrb[0].mxu0 %v2614_v7  ;;  %1742 = vmatmul.mubr.f32.vlgmr.msra.gmra.mrb[0].mxu1 %v2616_v8  ;;  %v1755_v7 = vld [vmem:[%s3388_s5] sm:$0x3] }
  0x59   : > { %1109 = vmatprep.mubr.f32.mxu0 %v2523_v2  ;;  %1747 = vmatprep.mubr.f32.mxu1 %v2523_v2  ;;  %v1791_v8 = vld [vmem:[%s3389_s6] sm:$0x3]  ;;  %v1765_v2 = vsub.s32 1, %v1760_v18  ;;  %v1762_v27 = vrot.slane %v1755_v7, %v1761_v20 }
  0x5b   : > { %v1802_v42 = vrot.slane %v1791_v8, %v1765_v2 }
  0x5c   : > { %1111 = vmatmul.mubr.f32.gmra.mrb[2].mxu0 %v2621_v12  ;;  %1749 = vmatmul.mubr.f32.gmra.mrb[2].mxu1 %v2623_v13  ;;  %v1798_v12 = vrot.slane %v1791_v8, %v1761_v20  ;;  %v1766_v13 = vrot.slane %v1755_v7, %v1765_v2 }
  0x8a   : > { %v1772_v16 = vpop.permute.xlu0 %1771  ;;  %v478_v21 = vpop.permute.xlu1 %477 }
  0x8b   : > { %v1779_v48 = vadd.f32 %v1772_v16, %v1762_v27  ;;  %v1780_v54 = vadd.f32 %v1772_v16, %v1766_v13 }
  0x8d   : > { %v2258_v0 = vadd.f32 -1.0, %v1779_v48  ;;  %v2259_v34 = vadd.f32 -1.0, %v1780_v54 }
  0x8e   : > { %v2872_v19 = vpop.permute.xlu0 %1776  ;;  %v2880_v49 = vpop.permute.xlu1 %482 }
  0x8f   : > { %v1781_v35 = vadd.f32 %v2872_v19, %v1762_v27  ;;  %v2913_v24 = vadd.f32 %v2872_v19, %v1766_v13 }
  0x91   : > { %v2915_v25 = vadd.f32 -1.0, %v1781_v35 }
  0x92   : > { %v1808_v28 = vpop.permute.xlu0 %1807  ;;  %v1813_v14 = vpop.permute.xlu1 %1812 }
  0x93   : > { %v1815_v52 = vadd.f32 %v1808_v28, %v1798_v12  ;;  %v1816_v58 = vadd.f32 %v1808_v28, %v1802_v42  ;;  %v1817_v37 = vadd.f32 %v1813_v14, %v1798_v12  ;;  %v2921_v32 = vadd.f32 %v1813_v14, %v1802_v42 }
  0x95   : > { %v2262_v1 = vadd.f32 -1.0, %v1815_v52  ;;  %v2263_v36 = vadd.f32 -1.0, %v1816_v58  ;;  %v2264_v16 = vadd.f32 -1.0, %v1817_v37 }
  0x99   : > { %v1124_v53 = vpop.permute.xlu0 %1123  ;;  %v2962_v12 = vpop.permute.xlu1 %1128 }
 0x12b   : > { %v1105_v60 = vpop.f32.mrb[0].mxu0  ;;  %v1743_v61 = vpop.f32.mrb[0].mxu1 }
 0x12c   : > { %v2390_v3 = vadd.f32 %v1105_v60, %v478_v21  ;;  %v2394_v4 = vadd.f32 %v1743_v61, %v1124_v53  ;;  %v1107_v5 = vpop.f32.mrb[1].mxu0  ;;  %v1745_v6 = vpop.f32.mrb[1].mxu1 }
 0x12d   : > { %v2391_v10 = vadd.f32 %v1107_v5, %v478_v21  ;;  %v2395_v11 = vadd.f32 %v1745_v6, %v1124_v53 }
 0x12e   : > { %v1787_v26 = vadd.f32 %v2390_v3, %v2258_v0  ;;  %v1823_v31 = vadd.f32 %v2394_v4, %v2262_v1 }
 0x12f   : > { %v2883_v38 = vpop.f32.mrb[2].mxu0  ;;  %v2885_v39 = vpop.f32.mrb[2].mxu1  ;;  %v2891_v45 = vadd.f32 %v2391_v10, %v2259_v34  ;;  %v2893_v46 = vadd.f32 %v2395_v11, %v2263_v36 }
 0x130   : > { %vm1827_vm2 = vcmp.gt.f32.partialorder %v1787_v26, -1.0  ;;  %vm1831_vm3 = vcmp.lt.f32.partialorder %v1787_v26, 16.0  ;;  %v1855_v40 = vfloor.f32 %v1787_v26  ;;  %vm1839_vm4 = vcmp.gt.f32.partialorder %v1823_v31, -1.0  ;;  %v2887_v41 = vpop.f32.mrb[3].mxu0  ;;  %v2889_v43 = vpop.f32.mrb[3].mxu1 }
 0x131   : > { %vm1835_vm5 = vmand %vm1827_vm2, %vm1831_vm3  ;;  %vm1847_vm6 = vcmp.lt.f32.partialorder %v1823_v31, 16.0  ;;  %v1859_v44 = vfloor.f32 %v1823_v31  ;;  %v2910_v63 = vfloor.f32 %v2891_v45  ;;  %v2935_v18 = vfloor.f32 %v2893_v46 }
 0x132   : > { %v1863_v56 = vsub.f32 %v1787_v26, %v1855_v40  ;;  %vm1843_vm7 = vmand %vm1835_vm5, %vm1839_vm4  ;;  %v1879_v57 = vmul.f32 16.0, %v1855_v40  ;;  %vm1887_vm8 = vcmp.ge.f32.partialorder %v1855_v40, 0.0  ;;  %vm1891_vm9 = vcmp.le.f32.partialorder %v1855_v40, 15.0 }
 0x133   : > { %vm2895_vm10 = vmand %vm1843_vm7, %vm1847_vm6  ;;  %v1867_v9 = vsub.f32 %v1823_v31, %v1859_v44  ;;  %vm1899_vm11 = vcmp.ge.f32.partialorder %v1855_v40, -1.0  ;;  %vm1903_vm12 = vcmp.le.f32.partialorder %v1855_v40, 14.0  ;;  %vm1911_vm13 = vcmp.ge.f32.partialorder %v1859_v44, 0.0 }
 0x134   : > { %v1871_v17 = vsub.f32 1.0, %v1863_v56  ;;  %v1883_v22 = vadd.f32 %v1879_v57, %v1859_v44  ;;  %vm2899_vm14 = vmand %vm1887_vm8, %vm1891_vm9  ;;  %vm1915_vm15 = vcmp.le.f32.partialorder %v1859_v44, 15.0  ;;  %vm1923_vm0 = vcmp.ge.f32.partialorder %v1859_v44, -1.0 }
 0x135   : > { %v1875_v50 = vsub.f32 1.0, %v1867_v9  ;;  %vm2903_vm1 = vmand %vm1899_vm11, %vm1903_vm12  ;;  %vm1927_vm2 = vcmp.le.f32.partialorder %v1859_v44, 14.0  ;;  %v2907_v59 = vmul.f32 %v1867_v9, %v1863_v56  ;;  %v1864_v15 = vsub.f32 %v2891_v45, %v2910_v63 }
 0x136   : > { %vm2917_vm3 = vmand %vm1911_vm13, %vm1915_vm15  ;;  %v1947_v30 = vmul.f32 %v1871_v17, %v1867_v9  ;;  %vm1828_vm6 = vcmp.gt.f32.partialorder %v2891_v45, -1.0  ;;  %v1880_v19 = vmul.f32 16.0, %v2910_v63  ;;  %v1999_v20 = vadd.f32 1.0, %v1883_v22 }
 0x137   : > { %vm2923_vm4 = vmand %vm1923_vm0, %vm1927_vm2  ;;  %v1939_v47 = vmul.f32 %v1875_v50, %v1871_v17  ;;  %v1955_v55 = vmul.f32 %v1875_v50, %v1863_v56  ;;  %v2029_v7 = vadd.f32 16.0, %v1883_v22  ;;  %vm1832_vm8 = vcmp.lt.f32.partialorder %v2891_v45, 16.0 }
 0x138   : > { %vm1935_vm5 = vmand %vm2899_vm14, %vm2917_vm3  ;;  %v1872_v8 = vsub.f32 1.0, %v1864_v15  ;;  %v2059_v21 = vadd.f32 17.0, %v1883_v22  ;;  %v1868_v2 = vsub.f32 %v2893_v46, %v2935_v18  ;;  %v2952_v27 = vadd.f32 %v1880_v19, %v2935_v18 }
 0x139   : > { %vm1943_vm7 = vmand %vm2899_vm14, %vm2923_vm4  ;;  %vm1888_vm15 = vcmp.ge.f32.partialorder %v2910_v63, 0.0  ;;  %vm1892_vm0 = vcmp.le.f32.partialorder %v2910_v63, 15.0  ;;  %vm1900_vm2 = vcmp.ge.f32.partialorder %v2910_v63, -1.0  ;;  %vm1904_vm13 = vcmp.le.f32.partialorder %v2910_v63, 14.0 }
 0x13a   : > { %vm1951_vm9 = vmand %vm2903_vm1, %vm2917_vm3  ;;  %v1876_v28 = vsub.f32 1.0, %v1868_v2  ;;  %v2972_v13 = vmul.f32 %v1872_v8, %v1868_v2  ;;  %v2974_v42 = vmul.f32 %v1868_v2, %v1864_v15  ;;  %v2392_v53 = vadd.f32 %v2883_v38, %v2880_v49 }
 0x13b   : > { %vm1959_vm12 = vmand %vm2903_vm1, %vm2923_vm4  ;;  %v2396_v54 = vadd.f32 %v2885_v39, %v2962_v12  ;;  %vm3404_vm1 = vcmp.gt.f32.partialorder %v2893_v46, -1.0  ;;  %vm3405_vm4 = vcmp.lt.f32.partialorder %v2893_v46, 16.0  ;;  %v2393_v38 = vadd.f32 %v2887_v41, %v2880_v49 }
 0x13c   : > { %vm1967_vm11 = vmand %vm2895_vm10, %vm1935_vm5  ;;  %v3002_v0 = vmul.f32 %v1876_v28, %v1872_v8  ;;  %v3019_v5 = vmul.f32 %v1876_v28, %v1864_v15  ;;  %v3031_v34 = vadd.f32 %v2392_v53, %v2915_v25  ;;  %v2261_v45 = vadd.f32 -1.0, %v2913_v24 }
 0x13d   : > { %v1975_v48 = vsel %vm1967_vm11, %v1883_v22, 0.0  ;;  %v1987_v52 = vsel %vm1967_vm11, %v1939_v47, 0.0  ;;  %vm1995_vm5 = vmand %vm2895_vm10, %vm1943_vm7  ;;  %v3033_v35 = vadd.f32 %v2396_v54, %v2264_v16  ;;  %v2265_v22 = vadd.f32 -1.0, %v2921_v32 }
 0x13e   : > { %v2439_v58 = vtrunc.f32 %v1975_v48  ;;  %1991 = vst [vmem:[%s2981_s20] sm:$0xff] %v1987_v52  ;;  %v2003_v60 = vsel %vm1995_vm5, %v1999_v20, 0.0  ;;  %v2016_v61 = vsel %vm1995_vm5, %v1947_v30, 0.0  ;;  %vm2025_vm14 = vmand %vm2895_vm10, %vm1951_vm9  ;;  %vm1928_vm5 = vcmp.le.f32.partialorder %v2935_v18, 14.0 }
 0x13f   : > { %v2447_v1 = vtrunc.f32 %v2003_v60  ;;  %2270 = vst [vmem:[%s2981_s20 + $0x20] sm:$0xff] %v2016_v61  ;;  %v2033_v3 = vsel %vm2025_vm14, %v2029_v7, 0.0  ;;  %v2046_v4 = vsel %vm2025_vm14, %v1955_v55, 0.0  ;;  %vm2055_vm3 = vmand %vm2895_vm10, %vm1959_vm12  ;;  %vm1924_vm12 = vcmp.ge.f32.partialorder %v2935_v18, -1.0 }
 0x140   : > { %v2440_v6 = vcvt.f32.s32 %v2439_v58  ;;  %v2455_v10 = vtrunc.f32 %v2033_v3  ;;  %2278 = vst [vmem:[%s2981_s20 + $0x40] sm:$0xff] %v2046_v4  ;;  %v2063_v11 = vsel %vm2055_vm3, %v2059_v21, 0.0  ;;  %v2076_v14 = vsel %vm2055_vm3, %v2907_v59, 0.0  ;;  %vm1836_vm7 = vmand %vm1828_vm6, %vm1832_vm8 }
 0x141   : > { %v2448_v26 = vcvt.f32.s32 %v2447_v1  ;;  %v2463_v31 = vtrunc.f32 %v2063_v11  ;;  %2286 = vst [vmem:[%s2981_s20 + $0x60] sm:$0xff] %v2076_v14  ;;  %vm1844_vm10 = vmand %vm1836_vm7, %vm3404_vm1  ;;  %vm1912_vm6 = vcmp.ge.f32.partialorder %v2935_v18, 0.0  ;;  %vm1916_vm8 = vcmp.le.f32.partialorder %v2935_v18, 15.0 }
 0x142   : > { %1983 = vst [vmem:[%s3009_s23] sm:$0xff] %v2440_v6  ;;  %v2456_v36 = vcvt.f32.s32 %v2455_v10  ;;  %vm3038_vm9 = vmand %vm1844_vm10, %vm3405_vm4  ;;  %v3058_v44 = vfloor.f32 %v3031_v34  ;;  %v3071_v41 = vfloor.f32 %v3033_v35  ;;  %v3087_v17 = vadd.f32 %v2393_v38, %v2261_v45 }
 0x143   : > { %2266 = vst [vmem:[%s3009_s23 + $0x20] sm:$0xff] %v2448_v26  ;;  %v2464_v39 = vcvt.f32.s32 %v2463_v31  ;;  %vm3051_vm11 = vmand %vm1888_vm15, %vm1892_vm0  ;;  %v2000_v23 = vadd.f32 1.0, %v2952_v27  ;;  %v2030_v59 = vadd.f32 16.0, %v2952_v27  ;;  %v2397_v25 = vadd.f32 %v2889_v43, %v2962_v12 }
 0x144   : > { %2274 = vst [vmem:[%s3009_s23 + $0x40] sm:$0xff] %v2456_v36  ;;  %vm3066_vm14 = vmand %vm1900_vm2, %vm1904_vm13  ;;  %v1865_v56 = vsub.f32 %v3031_v34, %v3058_v44  ;;  %v1881_v57 = vmul.f32 16.0, %v3058_v44  ;;  %v1869_v9 = vsub.f32 %v3033_v35, %v3071_v41  ;;  %v2060_v29 = vadd.f32 17.0, %v2952_v27 }
 0x145   : > { %2282 = vst [vmem:[%s3009_s23 + $0x60] sm:$0xff] %v2464_v39  ;;  %vm3074_vm15 = vmand %vm1912_vm6, %vm1916_vm8  ;;  %vm1829_vm7 = vcmp.gt.f32.partialorder %v3031_v34, -1.0  ;;  %vm1833_vm1 = vcmp.lt.f32.partialorder %v3031_v34, 16.0  ;;  %v3126_v33 = vfloor.f32 %v3087_v17  ;;  %vm1849_vm8 = vcmp.lt.f32.partialorder %v3033_v35, 16.0 }
 0x146   : > { %vm3081_vm0 = vmand %vm1924_vm12, %vm1928_vm5  ;;  %v1873_v50 = vsub.f32 1.0, %v1865_v56  ;;  %v3096_v51 = vadd.f32 %v1881_v57, %v3071_v41  ;;  %v1877_v63 = vsub.f32 1.0, %v1869_v9  ;;  %v3103_v24 = vmul.f32 %v1869_v9, %v1865_v56 }
 0x147   : > { %vm1936_vm13 = vmand %vm3051_vm11, %vm3074_vm15  ;;  %vm1889_vm12 = vcmp.ge.f32.partialorder %v3058_v44, 0.0  ;;  %vm1893_vm5 = vcmp.le.f32.partialorder %v3058_v44, 15.0  ;;  %vm1901_vm4 = vcmp.ge.f32.partialorder %v3058_v44, -1.0  ;;  %v1866_v15 = vsub.f32 %v3087_v17, %v3126_v33 }
 0x148   : > { %vm1944_vm2 = vmand %vm3051_vm11, %vm3081_vm0  ;;  %v3114_v30 = vmul.f32 %v1873_v50, %v1869_v9  ;;  %v3121_v43 = vmul.f32 %v1877_v63, %v1873_v50  ;;  %v3123_v32 = vmul.f32 %v1877_v63, %v1865_v56  ;;  %v3150_v16 = vadd.f32 %v2397_v25, %v2265_v22 }
 0x149   : > { %vm1952_vm3 = vmand %vm3066_vm14, %vm3074_vm15  ;;  %v1882_v2 = vmul.f32 16.0, %v3126_v33  ;;  %v1874_v53 = vsub.f32 1.0, %v1866_v15  ;;  %v2001_v31 = vadd.f32 1.0, %v3096_v51  ;;  %v2031_v34 = vadd.f32 16.0, %v3096_v51 }
 0x14a   : > { %vm1960_vm10 = vmand %vm3066_vm14, %vm3081_vm0  ;;  %vm3416_vm14 = vcmp.gt.f32.partialorder %v3033_v35, -1.0  ;;  %v3182_v54 = vfloor.f32 %v3150_v16  ;;  %v2061_v35 = vadd.f32 17.0, %v3096_v51 }
 0x14b   : > { %vm1968_vm6 = vmand %vm3038_vm9, %vm1936_vm13 }
 0x14c   : > { %v1976_v47 = vsel %vm1968_vm6, %v2952_v27, 0.0  ;;  %v1988_v55 = vsel %vm1968_vm6, %v3002_v0, 0.0  ;;  %vm1996_vm13 = vmand %vm3038_vm9, %vm1944_vm2  ;;  %vm1905_vm2 = vcmp.le.f32.partialorder %v3058_v44, 14.0  ;;  %v1870_v0 = vsub.f32 %v3150_v16, %v3182_v54 }
 0x14d   : > { %v2441_v18 = vtrunc.f32 %v1976_v47  ;;  %1992 = vst [vmem:[%s2981_s20 + $0x8] sm:$0xff] %v1988_v55  ;;  %v2004_v19 = vsel %vm1996_vm13, %v2000_v23, 0.0  ;;  %v2017_v20 = vsel %vm1996_vm13, %v2972_v13, 0.0  ;;  %vm2026_vm11 = vmand %vm3038_vm9, %vm1952_vm3  ;;  %v3207_v1 = vadd.f32 %v1882_v2, %v3182_v54 }
 0x14e   : > { %v2449_v7 = vtrunc.f32 %v2004_v19  ;;  %2271 = vst [vmem:[%s2981_s20 + $0x28] sm:$0xff] %v2017_v20  ;;  %v2034_v8 = vsel %vm2026_vm11, %v2030_v59, 0.0  ;;  %v2047_v21 = vsel %vm2026_vm11, %v3019_v5, 0.0  ;;  %vm2056_vm15 = vmand %vm3038_vm9, %vm1960_vm10  ;;  %vm1925_vm10 = vcmp.ge.f32.partialorder %v3071_v41, -1.0 }
 0x14f   : > { %v2442_v27 = vcvt.f32.s32 %v2441_v18  ;;  %v2457_v12 = vtrunc.f32 %v2034_v8  ;;  %2279 = vst [vmem:[%s2981_s20 + $0x48] sm:$0xff] %v2047_v21  ;;  %v2064_v28 = vsel %vm2056_vm15, %v2060_v29, 0.0  ;;  %v2077_v13 = vsel %vm2056_vm15, %v2974_v42, 0.0  ;;  %vm1837_vm3 = vmand %vm1829_vm7, %vm1833_vm1 }
 0x150   : > { %v2450_v48 = vcvt.f32.s32 %v2449_v7  ;;  %v2465_v52 = vtrunc.f32 %v2064_v28  ;;  %2287 = vst [vmem:[%s2981_s20 + $0x68] sm:$0xff] %v2077_v13  ;;  %vm1845_vm9 = vmand %vm1837_vm3, %vm3416_vm14  ;;  %vm1913_vm7 = vcmp.ge.f32.partialorder %v3071_v41, 0.0  ;;  %vm1917_vm1 = vcmp.le.f32.partialorder %v3071_v41, 15.0 }
 0x151   : > { %1984 = vst [vmem:[%s3009_s23 + $0x8] sm:$0xff] %v2442_v27  ;;  %v2458_v58 = vcvt.f32.s32 %v2457_v12  ;;  %vm3187_vm0 = vmand %vm1845_vm9, %vm1849_vm8  ;;  %vm1929_vm8 = vcmp.le.f32.partialorder %v3071_v41, 14.0  ;;  %v1878_v5 = vsub.f32 1.0, %v1870_v0  ;;  %v3223_v6 = vmul.f32 %v1874_v53, %v1870_v0 }
 0x152   : > { %2267 = vst [vmem:[%s3009_s23 + $0x28] sm:$0xff] %v2450_v48  ;;  %v2466_v60 = vcvt.f32.s32 %v2465_v52  ;;  %vm3199_vm6 = vmand %vm1889_vm12, %vm1893_vm5  ;;  %v3225_v10 = vmul.f32 %v1870_v0, %v1866_v15  ;;  %vm1830_vm14 = vcmp.gt.f32.partialorder %v3087_v17, -1.0  ;;  %vm1834_vm9 = vcmp.lt.f32.partialorder %v3087_v17, 16.0 }
 0x153   : > { %2275 = vst [vmem:[%s3009_s23 + $0x48] sm:$0xff] %v2458_v58  ;;  %vm3214_vm13 = vmand %vm1901_vm4, %vm1905_vm2  ;;  %v3235_v14 = vmul.f32 %v1878_v5, %v1874_v53  ;;  %v3237_v26 = vmul.f32 %v1878_v5, %v1866_v15  ;;  %v2032_v25 = vadd.f32 16.0, %v3207_v1  ;;  %v2062_v29 = vadd.f32 17.0, %v3207_v1 }
 0x154   : > { %2283 = vst [vmem:[%s3009_s23 + $0x68] sm:$0xff] %v2466_v60  ;;  %vm3219_vm12 = vmand %vm1913_vm7, %vm1917_vm1  ;;  %vm1842_vm1 = vcmp.gt.f32.partialorder %v3150_v16, -1.0 }
 0x155   : > { %vm3227_vm5 = vmand %vm1925_vm10, %vm1929_vm8  ;;  %vm1850_vm10 = vcmp.lt.f32.partialorder %v3150_v16, 16.0  ;;  %vm1890_vm8 = vcmp.ge.f32.partialorder %v3126_v33, 0.0 }
 0x156   : > { %vm1937_vm4 = vmand %vm3199_vm6, %vm3219_vm12 }
 0x157   : > { %vm1945_vm11 = vmand %vm3199_vm6, %vm3227_vm5 }
 0x158   : > { %vm1953_vm2 = vmand %vm3214_vm13, %vm3219_vm12 }
 0x159   : > { %vm1961_vm15 = vmand %vm3214_vm13, %vm3227_vm5  ;;  %vm1902_vm13 = vcmp.ge.f32.partialorder %v3126_v33, -1.0  ;;  %vm1906_vm5 = vcmp.le.f32.partialorder %v3126_v33, 14.0 }
 0x15a   : > { %vm1969_vm3 = vmand %vm3187_vm0, %vm1937_vm4  ;;  %vm1894_vm4 = vcmp.le.f32.partialorder %v3126_v33, 15.0 }
 0x15b   : > { %v1977_v36 = vsel %vm1969_vm3, %v3096_v51, 0.0  ;;  %v1989_v37 = vsel %vm1969_vm3, %v3121_v43, 0.0  ;;  %vm1997_vm7 = vmand %vm3187_vm0, %vm1945_vm11  ;;  %vm1918_vm3 = vcmp.le.f32.partialorder %v3182_v54, 15.0 }
 0x15c   : > { %v2443_v38 = vtrunc.f32 %v1977_v36  ;;  %1993 = vst [vmem:[%s2981_s20 + $0x10] sm:$0x1] %v1989_v37  ;;  %v2005_v39 = vsel %vm1997_vm7, %v2001_v31, 0.0  ;;  %v2018_v40 = vsel %vm1997_vm7, %v3114_v30, 0.0  ;;  %vm2027_vm6 = vmand %vm3187_vm0, %vm1953_vm2  ;;  %vm1930_vm7 = vcmp.le.f32.partialorder %v3182_v54, 14.0 }
 0x15d   : > { %v2451_v44 = vtrunc.f32 %v2005_v39  ;;  %2272 = vst [vmem:[%s2981_s20 + $0x30] sm:$0x1] %v2018_v40  ;;  %v2035_v45 = vsel %vm2027_vm6, %v2031_v34, 0.0  ;;  %v2048_v49 = vsel %vm2027_vm6, %v3123_v32, 0.0  ;;  %vm2057_vm12 = vmand %vm3187_vm0, %vm1961_vm15  ;;  %vm1914_vm15 = vcmp.ge.f32.partialorder %v3182_v54, 0.0 }
 0x15e   : > { %v2444_v41 = vcvt.f32.s32 %v2443_v38  ;;  %v2459_v46 = vtrunc.f32 %v2035_v45  ;;  %2280 = vst [vmem:[%s2981_s20 + $0x50] sm:$0x1] %v2048_v49  ;;  %v2065_v56 = vsel %vm2057_vm12, %v2061_v35, 0.0  ;;  %v2078_v57 = vsel %vm2057_vm12, %v3103_v24, 0.0  ;;  %vm1838_vm11 = vmand %vm1830_vm14, %vm1834_vm9 }
 0x15f   : > { %v2452_v62 = vcvt.f32.s32 %v2451_v44  ;;  %v2467_v9 = vtrunc.f32 %v2065_v56  ;;  %2288 = vst [vmem:[%s2981_s20 + $0x70] sm:$0x1] %v2078_v57  ;;  %vm1846_vm0 = vmand %vm1838_vm11, %vm1842_vm1  ;;  %vm1926_vm9 = vcmp.ge.f32.partialorder %v3182_v54, -1.0  ;;  %v2002_v24 = vadd.f32 1.0, %v3207_v1 }
 0x160   : > { %1985 = vst [vmem:[%s3009_s23 + $0x10] sm:$0x1] %v2444_v41  ;;  %v2460_v22 = vcvt.f32.s32 %v2459_v46  ;;  %vm3298_vm2 = vmand %vm1846_vm0, %vm1850_vm10 }
 0x161   : > { %2268 = vst [vmem:[%s3009_s23 + $0x30] sm:$0x1] %v2452_v62  ;;  %v2468_v17 = vcvt.f32.s32 %v2467_v9  ;;  %vm3309_vm14 = vmand %vm1890_vm8, %vm1894_vm4 }
 0x162   : > { %2276 = vst [vmem:[%s3009_s23 + $0x50] sm:$0x1] %v2460_v22  ;;  %vm3316_vm1 = vmand %vm1902_vm13, %vm1906_vm5 }
 0x163   : > { %2284 = vst [vmem:[%s3009_s23 + $0x70] sm:$0x1] %v2468_v17  ;;  %vm3321_vm10 = vmand %vm1914_vm15, %vm1918_vm3 }
 0x164   : > { %vm3325_vm6 = vmand %vm1926_vm9, %vm1930_vm7 }
 0x165   : > { %vm1938_vm8 = vmand %vm3309_vm14, %vm3321_vm10 }
 0x166   : > { %vm1946_vm12 = vmand %vm3309_vm14, %vm3325_vm6 }
 0x167   : > { %vm1954_vm4 = vmand %vm3316_vm1, %vm3321_vm10 }
 0x168   : > { %vm1962_vm11 = vmand %vm3316_vm1, %vm3325_vm6 }
 0x169   : > { %vm1970_vm0 = vmand %vm3298_vm2, %vm1938_vm8 }
 0x16a   : > { %v1978_v30 = vsel %vm1970_vm0, %v3207_v1, 0.0  ;;  %v1990_v43 = vsel %vm1970_vm0, %v3235_v14, 0.0  ;;  %vm1998_vm13 = vmand %vm3298_vm2, %vm1946_vm12 }
 0x16b   : > { %v2445_v32 = vtrunc.f32 %v1978_v30  ;;  %1994 = vst [vmem:[%s2981_s20 + $0x18] sm:$0x1] %v1990_v43  ;;  %v2006_v33 = vsel %vm1998_vm13, %v2002_v24, 0.0  ;;  %v2019_v47 = vsel %vm1998_vm13, %v3223_v6, 0.0  ;;  %vm2028_vm5 = vmand %vm3298_vm2, %vm1954_vm4 }
 0x16c   : > { %v2453_v55 = vtrunc.f32 %v2006_v33  ;;  %2273 = vst [vmem:[%s2981_s20 + $0x38] sm:$0x1] %v2019_v47  ;;  %v2036_v15 = vsel %vm2028_vm5, %v2032_v25, 0.0  ;;  %v2049_v16 = vsel %vm2028_vm5, %v3237_v26, 0.0  ;;  %vm2058_vm15 = vmand %vm3298_vm2, %vm1962_vm11 }
 0x16d   : > { %v2446_v18 = vcvt.f32.s32 %v2445_v32  ;;  %v2461_v19 = vtrunc.f32 %v2036_v15  ;;  %2281 = vst [vmem:[%s2981_s20 + $0x58] sm:$0x1] %v2049_v16  ;;  %v2066_v20 = vsel %vm2058_vm15, %v2062_v29, 0.0  ;;  %v2079_v7 = vsel %vm2058_vm15, %v3225_v10, 0.0 }
 0x16e   : > { %v2454_v8 = vcvt.f32.s32 %v2453_v55  ;;  %v2469_v21 = vtrunc.f32 %v2066_v20  ;;  %2289 = vst [vmem:[%s2981_s20 + $0x78] sm:$0x1] %v2079_v7 }
 0x16f   : > { %1986 = vst [vmem:[%s3009_s23 + $0x18] sm:$0x1] %v2446_v18  ;;  %v2462_v2 = vcvt.f32.s32 %v2461_v19 }
 0x170   : > { %2269 = vst [vmem:[%s3009_s23 + $0x38] sm:$0x1] %v2454_v8  ;;  %v2470_v27 = vcvt.f32.s32 %v2469_v21 }
 0x171   : > { %2277 = vst [vmem:[%s3009_s23 + $0x58] sm:$0x1] %v2462_v2 }
 0x172   : > { %2285 = vst [vmem:[%s3009_s23 + $0x78] sm:$0x1] %v2470_v27 }
 0x173 PF: > { %s21_s15 = sadd.s32 1, %s2521_s15   ;;  %s3437_s13 = smov %s2517_s14 }
 0x174   : > { %p18_p5 = scmp.ge.s32.totalorder %s21_s15, 4   ;;  %s3438_s14 = smov %s3440_s16 }
 0x176   :  { %20 = sbr.rel (!%p18_p5) target bundleno = 2 (0x2), region = 110 }

// kernel: deform_conv2d_forward.3
= control target key start
LH: loop header
LB: loop body
LE: loop exit
PB: predicated region body
PF: predicated region fallthrough
CT: control target
= control target key end

     0   :  { %s599_s12 = smov 0   ;;  %s601_s13 = smov 0   ;;  %s662_s0 = inlined_call_operand.vmem [shape: bf16[2,144,256], index: 0, kind: input, shape index: {}]   ;;  %s663_s1 = inlined_call_operand.vmem [shape: bf16[8,144], index: 1, kind: input, shape index: {}]   ;;  %s664_s2 = inlined_call_operand.vmem [shape: f32[8,1], index: 2, kind: input, shape index: {}]   ;;  %s665_s3 = inlined_call_operand.vmem [shape: f32[2,8,256], index: 3, kind: output, shape index: {}]  }
   0x1   :  { %s603_s14 = smov 0  }
   0x2 LB: > { %s25_s15 = sadd.s32 1, %s572_s13  ;;  %p470_p0 = scmp.ge.s32.totalorder %s576_s14, 1  ;;  %s576_s14 = sphi %s603_s14, %s13_s14   ;;  %s572_s13 = sphi %s601_s13, %s667_s13   ;;  %s568_s12 = sphi %s599_s12, %s666_s12  }
   0x3   : > { %p27_p1 = scmp.ge.s32.totalorder %s25_s15, 2  ;;  %p158_p2 = scmp.lt.s32.totalorder %s576_s14, 3 }
   0x5   : > { %s669_s15 = smov (%p27_p1, %s25_s15), 0  ;;  %p159_p3 = pnand %p470_p0, %p158_p2 }
   0x6   : > { %p191_p4 = scmp.lt.s32.totalorder (!%p159_p3), %s568_s12, 1  ;;  %v211_v0 = vld [vmem:[%s663_s1] sm:$0xff] (!%p159_p3)  ;;  %vm332_vm0 = vcmask (!%p159_p3), 130048   ;;  %v578_v3 = vmov (!%p159_p3), 0  }
   0x7   : > { %162 = sbr.rel (%p159_p3) target bundleno = 271 (0x10f), region = 32  ;;  %v230_v1 = vld [vmem:[%s664_s2] sm:$0xff] (!%p159_p3)  ;;  %v475_v2 = vcombine.high (!%p159_p3), %v211_v0, %v211_v0  ;;  %524 = vset.pattern.permute.xlu0 (!%p159_p3), %v578_v3  ;;  %v474_v22 = vcombine.low (!%p159_p3), %v211_v0, %v211_v0 }
   0x8   : > { %233 = vperm.xlu0 (!%p159_p3), %524, %v230_v1  }
   0x9   : > { %494 = vmatprep.mubr.msk.bf16.mxu0 (!%p159_p3), %vm332_vm0, %v475_v2 }
   0xe   : > { %s671_s12 = smov (!%p191_p4, %s568_s12), 1 }
   0xf   : > { %s498_s20 = smul.u32 144, %s671_s12  ;;  %s497_s24 = sshll.u32 %s671_s12, 4 }
  0x10   : > { %s208_s27 = scalar_lea.vmem %s665_s3, %s497_s24 }
  0x11   : > { %s629_s23 = scalar_lea.vmem %s662_s0, %s498_s20 }
  0x12   : > { %v525_v4 = vld [vmem:[%s629_s23 + $0x4] ss:$8 sps:$4 sm:$0xff]   ;;  %v527_v5 = vld [vmem:[%s629_s23] ss:$8 sps:$4 sm:$0xff]   ;;  %v528_v6 = vld [vmem:[%s629_s23 + $0x14] ss:$8 sps:$4 sm:$0xff]  }
  0x13   : > { %336 = vmatprep.subr.bf16.mxu0 %v525_v4  ;;  %v530_v7 = vld [vmem:[%s629_s23 + $0x10] ss:$8 sps:$4 sm:$0xff]   ;;  %v531_v8 = vld [vmem:[%s629_s23 + $0x24] ss:$8 sps:$4 sm:$0xff]   ;;  %v533_v9 = vld [vmem:[%s629_s23 + $0x20] ss:$8 sps:$4 sm:$0xff]  }
  0x14   : > { %337 = vmatpush1.bf16.msra.mxu0 %v527_v5  ;;  %v534_v10 = vld [vmem:[%s629_s23 + $0x34] ss:$8 sps:$4 sm:$0xff]   ;;  %v536_v11 = vld [vmem:[%s629_s23 + $0x30] ss:$8 sps:$4 sm:$0xff]   ;;  %v537_v12 = vld [vmem:[%s629_s23 + $0x44] ss:$8 sps:$4 sm:$0xff]  }
  0x15   : > { %338 = vmatprep.subr.bf16.mxu0 %v528_v6  ;;  %v539_v13 = vld [vmem:[%s629_s23 + $0x40] ss:$8 sps:$4 sm:$0xff]   ;;  %v540_v14 = vld [vmem:[%s629_s23 + $0x54] ss:$8 sps:$4 sm:$0xff]   ;;  %v542_v15 = vld [vmem:[%s629_s23 + $0x50] ss:$8 sps:$4 sm:$0xff]  }
  0x16   : > { %v543_v16 = vld [vmem:[%s629_s23 + $0x64] ss:$8 sps:$4 sm:$0xff]   ;;  %v545_v17 = vld [vmem:[%s629_s23 + $0x60] ss:$8 sps:$4 sm:$0xff]   ;;  %v546_v18 = vld [vmem:[%s629_s23 + $0x74] ss:$8 sps:$4 sm:$0xff]  }
  0x17   : > { %v548_v19 = vld [vmem:[%s629_s23 + $0x70] ss:$8 sps:$4 sm:$0xff]   ;;  %v549_v20 = vld [vmem:[%s629_s23 + $0x84] ss:$8 sps:$4 sm:$0xff]   ;;  %v551_v21 = vld [vmem:[%s629_s23 + $0x80] ss:$8 sps:$4 sm:$0xff]  }
  0x18   : > { %339 = vmatpush1.bf16.msra.mxu0 %v530_v7 }
  0x19   : > { %340 = vmatprep.subr.bf16.mxu0 %v531_v8 }
  0x1c   : > { %341 = vmatpush1.bf16.msra.mxu0 %v533_v9 }
  0x1d   : > { %342 = vmatprep.subr.bf16.mxu0 %v534_v10 }
  0x20   : > { %343 = vmatpush1.bf16.msra.mxu0 %v536_v11 }
  0x21   : > { %344 = vmatprep.subr.bf16.mxu0 %v537_v12 }
  0x24   : > { %345 = vmatpush1.bf16.msra.mxu0 %v539_v13 }
  0x25   : > { %346 = vmatprep.subr.bf16.mxu0 %v540_v14 }
  0x28   : > { %347 = vmatpush1.bf16.msra.mxu0 %v542_v15 }
  0x29   : > { %348 = vmatprep.subr.bf16.mxu0 %v543_v16 }
  0x2c   : > { %349 = vmatpush1.bf16.msra.mxu0 %v545_v17 }
  0x2d   : > { %350 = vmatprep.subr.bf16.mxu0 %v546_v18 }
  0x30   : > { %351 = vmatpush1.bf16.msra.mxu0 %v548_v19 }
  0x31   : > { %352 = vmatprep.subr.bf16.mxu0 %v549_v20 }
  0x34   : > { %353 = vmatpush1.bf16.msra.mxu0 %v551_v21 }
  0x37   : > { %369 = vmatmul.mubr.bf16.vlgmr.msra.gmra.mrb[0].mxu0 %v474_v22 }
  0x87   : > { %v234_v23 = vpop.permute.xlu0 %233 }
 0x10a   : > { %v370_v24 = vpop.f32.mrb[0].mxu0 }
 0x10b   : > { %v371_v25 = vadd.f32 %v370_v24, %v234_v23  ;;  %v372_v26 = vpop.f32.mrb[1].mxu0 }
 0x10c   : > { %v373_v27 = vadd.f32 %v372_v26, %v234_v23  ;;  %v374_v28 = vpop.f32.mrb[2].mxu0 }
 0x10d   : > { %377 = vst [vmem:[%s208_s27] sm:$0xff] %v371_v25  ;;  %v375_v29 = vpop.f32.mrb[3].mxu0 }
 0x10e   : > { %378 = vst [vmem:[%s208_s27 + $0x8] sm:$0xff] %v373_v27 }
 0x10f PF: > { %s13_s14 = sadd.s32 1, %s576_s14   ;;  %s666_s12 = smov %s572_s13 }
 0x110   : > { %p10_p5 = scmp.ge.s32.totalorder %s13_s14, 4   ;;  %s667_s13 = smov %s669_s15 }
 0x112   :  { %12 = sbr.rel (!%p10_p5) target bundleno = 2 (0x2), region = 62 }

</bundles_post_ra>
